<compile_context>
chip_gen: v7x
topology: tpu7x:2x2x1
jax: 0.10.0
libtpu: 0.0.40
codegen_flags: <defaults>
</compile_context>

<pallas_src>
import functools
import math

import jax
import jax.numpy as jnp
from jax import lax
from jax.experimental import pallas as pl
from jax.experimental.pallas import tpu as pltpu


def _layer_norm(x, gamma, beta, eps=1e-5):
    # x: (S, H) f32, gamma/beta: (1, H) f32.  Single-pass variance.
    m = jnp.mean(x, axis=-1, keepdims=True)
    ms = jnp.mean(x * x, axis=-1, keepdims=True)
    var = ms - m * m
    inv = lax.rsqrt(var + eps)
    return (x - m) * inv * gamma + beta


def encoder_layer_kernel(
    x_ref,
    wq_ref, bq_ref, wk_ref, bk_ref, wv_ref, bv_ref, wo_ref, bo_ref,
    w1_ref, b1_ref, w2_ref, b2_ref,
    gamma_ref, beta_ref,
    out_ref,
    attn_scratch,                      # (S, H) f32 VMEM scratch
    *, n_heads: int,
):
    # One batch element per grid step.
    x = x_ref[0]                       # (S, H) f32
    S, H = x.shape
    head_dim = H // n_heads
    scale = jnp.float32(1.0 / math.sqrt(head_dim))

    xb = x.astype(jnp.bfloat16)        # bf16 MXU inputs, f32 accumulation

    # ---- Q / K / V projections (bf16 in, f32 out) ----
    q = jnp.dot(xb, wq_ref[...], preferred_element_type=jnp.float32) + bq_ref[...]
    k = jnp.dot(xb, wk_ref[...], preferred_element_type=jnp.float32) + bk_ref[...]
    v = jnp.dot(xb, wv_ref[...], preferred_element_type=jnp.float32) + bv_ref[...]

    qb = (q * scale).astype(jnp.bfloat16)   # fold softmax scale into q once
    kb = k.astype(jnp.bfloat16)
    vb = v.astype(jnp.bfloat16)

    # ---- Multi-head self-attention (Q=K=V=x, no mask) ----
    # Per-head results go straight into the (S, H) scratch (no concatenate).
    for h in range(n_heads):
        lo = h * head_dim
        qh = qb[:, lo:lo + head_dim]                      # (S, hd) bf16
        kh = kb[:, lo:lo + head_dim]                      # (S, hd) bf16
        vh = vb[:, lo:lo + head_dim]                      # (S, hd) bf16
        # energy[i, j] = qh[i] . kh[j]  (contract head_dim of both -> no .T)
        energy = lax.dot_general(
            qh, kh,
            dimension_numbers=(((1,), (1,)), ((), ())),
            preferred_element_type=jnp.float32,
        )                                                  # (S, S) f32
        energy = energy - jnp.max(energy, axis=-1, keepdims=True)
        p = jnp.exp(energy)
        p = p * pl.reciprocal(jnp.sum(p, axis=-1, keepdims=True), approx=True)
        attn_scratch[:, lo:lo + head_dim] = jnp.dot(
            p.astype(jnp.bfloat16), vh, preferred_element_type=jnp.float32)

    attn = jnp.dot(attn_scratch[...].astype(jnp.bfloat16), wo_ref[...],
                   preferred_element_type=jnp.float32) + bo_ref[...]

    # ---- Residual + LayerNorm (f32) ----
    y1 = _layer_norm(x + attn, gamma_ref[...], beta_ref[...])

    # ---- Position-wise feed-forward ----
    h1 = jnp.dot(y1.astype(jnp.bfloat16), w1_ref[...],
                 preferred_element_type=jnp.float32) + b1_ref[...]
    h1 = jnp.maximum(h1, 0.0)
    ffn = jnp.dot(h1.astype(jnp.bfloat16), w2_ref[...],
                  preferred_element_type=jnp.float32) + b2_ref[...]

    # ---- Residual + LayerNorm (same LayerNorm params, as in the module) ----
    out_ref[0] = _layer_norm(y1 + ffn, gamma_ref[...], beta_ref[...])


def encoder_layer(x, params, *, n_heads):
    B, S, H = x.shape
    PF = params["w1"].shape[1]

    # Weights go in as bf16 (halves DMA bytes / VMEM residency);
    # biases and LayerNorm params stay f32 (added to f32 accumulators).
    bf = lambda a: a.astype(jnp.bfloat16)

    full2d = lambda shape: pl.BlockSpec(shape, lambda b: (0, 0))
    kernel = functools.partial(encoder_layer_kernel, n_heads=n_heads)

    # Advisory cost estimate (per whole call).
    flops = 2 * B * S * (4 * H * H + 2 * H * PF + 2 * S * H)
    transcendentals = B * n_heads * S * S + 4 * B * S
    bytes_accessed = (4 * 2 * B * S * H                 # x in + out (f32)
                      + 2 * (4 * H * H + 2 * H * PF)    # bf16 weights
                      + 4 * (6 * H + PF))               # biases / gamma / beta

    return pl.pallas_call(
        kernel,
        out_shape=jax.ShapeDtypeStruct((B, S, H), jnp.float32),
        grid_spec=pltpu.PrefetchScalarGridSpec(
            num_scalar_prefetch=0,
            grid=(B,),
            in_specs=[
                pl.BlockSpec((1, S, H), lambda b: (b, 0, 0)),   # x
                full2d((H, H)), full2d((1, H)),                 # Wq, bq
                full2d((H, H)), full2d((1, H)),                 # Wk, bk
                full2d((H, H)), full2d((1, H)),                 # Wv, bv
                full2d((H, H)), full2d((1, H)),                 # Wo, bo
                full2d((H, PF)), full2d((1, PF)),               # W1, b1
                full2d((PF, H)), full2d((1, H)),                # W2, b2
                full2d((1, H)), full2d((1, H)),                 # gamma, beta
            ],
            out_specs=pl.BlockSpec((1, S, H), lambda b: (b, 0, 0)),
            scratch_shapes=[pltpu.VMEM((S, H), jnp.float32)],   # per-head attn output slab
        ),
        compiler_params=pltpu.CompilerParams(
            dimension_semantics=("parallel",),
            vmem_limit_bytes=64 * 1024 * 1024,
        ),
        cost_estimate=pl.CostEstimate(
            flops=flops,
            transcendentals=transcendentals,
            bytes_accessed=bytes_accessed,
        ),
    )(
        x,
        bf(params["wq"]), params["bq"], bf(params["wk"]), params["bk"],
        bf(params["wv"]), params["bv"], bf(params["wo"]), params["bo"],
        bf(params["w1"]), params["b1"], bf(params["w2"]), params["b2"],
        params["gamma"], params["beta"],
    )


def make_params(key, hid_dim, pf_dim):
    ks = jax.random.split(key, 12)
    s = 0.02
    return {
        "wq": s * jax.random.normal(ks[0], (hid_dim, hid_dim), jnp.float32),
        "bq": s * jax.random.normal(ks[1], (1, hid_dim), jnp.float32),
        "wk": s * jax.random.normal(ks[2], (hid_dim, hid_dim), jnp.float32),
        "bk": s * jax.random.normal(ks[3], (1, hid_dim), jnp.float32),
        "wv": s * jax.random.normal(ks[4], (hid_dim, hid_dim), jnp.float32),
        "bv": s * jax.random.normal(ks[5], (1, hid_dim), jnp.float32),
        "wo": s * jax.random.normal(ks[6], (hid_dim, hid_dim), jnp.float32),
        "bo": s * jax.random.normal(ks[7], (1, hid_dim), jnp.float32),
        "w1": s * jax.random.normal(ks[8], (hid_dim, pf_dim), jnp.float32),
        "b1": s * jax.random.normal(ks[9], (1, pf_dim), jnp.float32),
        "w2": s * jax.random.normal(ks[10], (pf_dim, hid_dim), jnp.float32),
        "b2": s * jax.random.normal(ks[11], (1, hid_dim), jnp.float32),
        "gamma": jnp.ones((1, hid_dim), jnp.float32),
        "beta": jnp.zeros((1, hid_dim), jnp.float32),
    }


def _reference(x, p, n_heads):
    # Pure-JAX f32 reference of the same forward, for a sanity check.
    B, S, H = x.shape
    hd = H // n_heads

    def ln(v):
        m = jnp.mean(v, axis=-1, keepdims=True)
        var = jnp.mean((v - m) ** 2, axis=-1, keepdims=True)
        return (v - m) / jnp.sqrt(var + 1e-5) * p["gamma"] + p["beta"]

    q = x @ p["wq"] + p["bq"]
    k = x @ p["wk"] + p["bk"]
    v = x @ p["wv"] + p["bv"]
    q = q.reshape(B, S, n_heads, hd).transpose(0, 2, 1, 3)
    k = k.reshape(B, S, n_heads, hd).transpose(0, 2, 1, 3)
    v = v.reshape(B, S, n_heads, hd).transpose(0, 2, 1, 3)
    e = jnp.einsum("bhqd,bhkd->bhqk", q, k) / math.sqrt(hd)
    a = jax.nn.softmax(e, axis=-1)
    o = jnp.einsum("bhqk,bhkd->bhqd", a, v).transpose(0, 2, 1, 3).reshape(B, S, H)
    attn = o @ p["wo"] + p["bo"]
    y1 = ln(x + attn)
    ffn = jnp.maximum(y1 @ p["w1"] + p["b1"], 0.0) @ p["w2"] + p["b2"]
    return ln(y1 + ffn)


if __name__ == "__main__":
    batch, seq, hid_dim, n_heads, pf_dim = 2, 8, 32, 4, 64

    key = jax.random.PRNGKey(0)
    kx, kp = jax.random.split(key)
    x = jax.random.normal(kx, (batch, seq, hid_dim), jnp.float32)
    params = make_params(kp, hid_dim, pf_dim)

    out = encoder_layer(x, params, n_heads=n_heads)
    out = jax.block_until_ready(out)

    ref = _reference(x, params, n_heads)
    assert out.shape == (batch, seq, hid_dim)
    # bf16 MXU inputs + approx reciprocal: compare against the f32 reference
    # with a tolerance that comfortably covers bf16 rounding.
    max_err = float(jnp.max(jnp.abs(out - ref)))
    assert max_err < 2e-2, f"mismatch vs pure-JAX reference: max abs err {max_err}"

    print("KERNEL_OK")
</pallas_src>

<mosaic_0001>
module attributes {stable_mosaic.version = 11 : i64} {
  func.func @encoder_layer_kernel(%arg0: i32, %arg1: memref<1x8x32xf32, #tpu.memory_space<vmem>>, %arg2: memref<32x32xbf16, #tpu.memory_space<vmem>>, %arg3: memref<1x32xf32, #tpu.memory_space<vmem>>, %arg4: memref<32x32xbf16, #tpu.memory_space<vmem>>, %arg5: memref<1x32xf32, #tpu.memory_space<vmem>>, %arg6: memref<32x32xbf16, #tpu.memory_space<vmem>>, %arg7: memref<1x32xf32, #tpu.memory_space<vmem>>, %arg8: memref<32x32xbf16, #tpu.memory_space<vmem>>, %arg9: memref<1x32xf32, #tpu.memory_space<vmem>>, %arg10: memref<32x64xbf16, #tpu.memory_space<vmem>>, %arg11: memref<1x64xf32, #tpu.memory_space<vmem>>, %arg12: memref<64x32xbf16, #tpu.memory_space<vmem>>, %arg13: memref<1x32xf32, #tpu.memory_space<vmem>>, %arg14: memref<1x32xf32, #tpu.memory_space<vmem>>, %arg15: memref<1x32xf32, #tpu.memory_space<vmem>>, %arg16: memref<1x8x32xf32, #tpu.memory_space<vmem>>, %arg17: memref<8x32xf32, #tpu.memory_space<vmem>>) attributes {dimension_semantics = [#tpu.dimension_semantics<parallel>], iteration_bounds = array<i64: 2>, scalar_prefetch = 0 : i64, scratch_operands = 1 : i64, tpu.core_type = #tpu.core_type<tc>, window_params = [{transform_indices = @transform_0, window_bounds = array<i64: 1, 8, 32>}, {pipeline_mode = #tpu.pipeline_mode<synchronous>, transform_indices = @transform_1, window_bounds = array<i64: 32, 32>}, {pipeline_mode = #tpu.pipeline_mode<synchronous>, transform_indices = @transform_2, window_bounds = array<i64: 1, 32>}, {pipeline_mode = #tpu.pipeline_mode<synchronous>, transform_indices = @transform_3, window_bounds = array<i64: 32, 32>}, {pipeline_mode = #tpu.pipeline_mode<synchronous>, transform_indices = @transform_4, window_bounds = array<i64: 1, 32>}, {pipeline_mode = #tpu.pipeline_mode<synchronous>, transform_indices = @transform_5, window_bounds = array<i64: 32, 32>}, {pipeline_mode = #tpu.pipeline_mode<synchronous>, transform_indices = @transform_6, window_bounds = array<i64: 1, 32>}, {pipeline_mode = #tpu.pipeline_mode<synchronous>, transform_indices = @transform_7, window_bounds = array<i64: 32, 32>}, {pipeline_mode = #tpu.pipeline_mode<synchronous>, transform_indices = @transform_8, window_bounds = array<i64: 1, 32>}, {pipeline_mode = #tpu.pipeline_mode<synchronous>, transform_indices = @transform_9, window_bounds = array<i64: 32, 64>}, {pipeline_mode = #tpu.pipeline_mode<synchronous>, transform_indices = @transform_10, window_bounds = array<i64: 1, 64>}, {pipeline_mode = #tpu.pipeline_mode<synchronous>, transform_indices = @transform_11, window_bounds = array<i64: 64, 32>}, {pipeline_mode = #tpu.pipeline_mode<synchronous>, transform_indices = @transform_12, window_bounds = array<i64: 1, 32>}, {pipeline_mode = #tpu.pipeline_mode<synchronous>, transform_indices = @transform_13, window_bounds = array<i64: 1, 32>}, {pipeline_mode = #tpu.pipeline_mode<synchronous>, transform_indices = @transform_14, window_bounds = array<i64: 1, 32>}, {transform_indices = @transform_15, window_bounds = array<i64: 1, 8, 32>}]} {
    %c0 = arith.constant 0 : index
    %c0_0 = arith.constant 0 : index
    %c0_1 = arith.constant 0 : index
    %0 = vector.load %arg1[%c0, %c0_0, %c0_1] : memref<1x8x32xf32, #tpu.memory_space<vmem>>, vector<1x8x32xf32>
    %1 = vector.shape_cast %0 : vector<1x8x32xf32> to vector<8x32xf32>
    %2 = arith.truncf %1 : vector<8x32xf32> to vector<8x32xbf16>
    %c0_2 = arith.constant 0 : index
    %c0_3 = arith.constant 0 : index
    %3 = vector.load %arg2[%c0_2, %c0_3] : memref<32x32xbf16, #tpu.memory_space<vmem>>, vector<32x32xbf16>
    %cst = arith.constant dense<0.000000e+00> : vector<8x32xf32>
    %4 = tpu.matmul %2, %3, %cst {dimension_numbers = #tpu.dot_dimension_numbers<[1], [0], [0], [1], [0, 0, 1, 1], [], []>} : vector<8x32xbf16>, vector<32x32xbf16>, vector<8x32xf32> -> vector<8x32xf32>
    %c0_4 = arith.constant 0 : index
    %c0_5 = arith.constant 0 : index
    %5 = vector.load %arg3[%c0_4, %c0_5] : memref<1x32xf32, #tpu.memory_space<vmem>>, vector<1x32xf32>
    %6 = vector.broadcast %5 : vector<1x32xf32> to vector<8x32xf32>
    %7 = arith.addf %4, %6 : vector<8x32xf32>
    %c0_6 = arith.constant 0 : index
    %c0_7 = arith.constant 0 : index
    %8 = vector.load %arg4[%c0_6, %c0_7] : memref<32x32xbf16, #tpu.memory_space<vmem>>, vector<32x32xbf16>
    %cst_8 = arith.constant dense<0.000000e+00> : vector<8x32xf32>
    %9 = tpu.matmul %2, %8, %cst_8 {dimension_numbers = #tpu.dot_dimension_numbers<[1], [0], [0], [1], [0, 0, 1, 1], [], []>} : vector<8x32xbf16>, vector<32x32xbf16>, vector<8x32xf32> -> vector<8x32xf32>
    %c0_9 = arith.constant 0 : index
    %c0_10 = arith.constant 0 : index
    %10 = vector.load %arg5[%c0_9, %c0_10] : memref<1x32xf32, #tpu.memory_space<vmem>>, vector<1x32xf32>
    %11 = vector.broadcast %10 : vector<1x32xf32> to vector<8x32xf32>
    %12 = arith.addf %9, %11 : vector<8x32xf32>
    %c0_11 = arith.constant 0 : index
    %c0_12 = arith.constant 0 : index
    %13 = vector.load %arg6[%c0_11, %c0_12] : memref<32x32xbf16, #tpu.memory_space<vmem>>, vector<32x32xbf16>
    %cst_13 = arith.constant dense<0.000000e+00> : vector<8x32xf32>
    %14 = tpu.matmul %2, %13, %cst_13 {dimension_numbers = #tpu.dot_dimension_numbers<[1], [0], [0], [1], [0, 0, 1, 1], [], []>} : vector<8x32xbf16>, vector<32x32xbf16>, vector<8x32xf32> -> vector<8x32xf32>
    %c0_14 = arith.constant 0 : index
    %c0_15 = arith.constant 0 : index
    %15 = vector.load %arg7[%c0_14, %c0_15] : memref<1x32xf32, #tpu.memory_space<vmem>>, vector<1x32xf32>
    %16 = vector.broadcast %15 : vector<1x32xf32> to vector<8x32xf32>
    %17 = arith.addf %14, %16 : vector<8x32xf32>
    %cst_16 = arith.constant 0.353553385 : f32
    %18 = vector.broadcast %cst_16 : f32 to vector<8x32xf32>
    %19 = arith.mulf %7, %18 : vector<8x32xf32>
    %20 = arith.truncf %19 : vector<8x32xf32> to vector<8x32xbf16>
    %21 = arith.truncf %12 : vector<8x32xf32> to vector<8x32xbf16>
    %22 = arith.truncf %17 : vector<8x32xf32> to vector<8x32xbf16>
    %23 = vector.extract_strided_slice %20 {offsets = [0, 0], sizes = [8, 8], strides = [1, 1]} : vector<8x32xbf16> to vector<8x8xbf16>
    %24 = vector.extract_strided_slice %21 {offsets = [0, 0], sizes = [8, 8], strides = [1, 1]} : vector<8x32xbf16> to vector<8x8xbf16>
    %25 = vector.extract_strided_slice %22 {offsets = [0, 0], sizes = [8, 8], strides = [1, 1]} : vector<8x32xbf16> to vector<8x8xbf16>
    %cst_17 = arith.constant dense<0.000000e+00> : vector<8x8xf32>
    %26 = tpu.matmul %23, %24, %cst_17 {dimension_numbers = #tpu.dot_dimension_numbers<[1], [1], [0], [0], [0, 0, 1, 0], [], []>} : vector<8x8xbf16>, vector<8x8xbf16>, vector<8x8xf32> -> vector<8x8xf32>
    %cst_18 = arith.constant dense<0xFF800000> : vector<8xf32>
    %27 = vector.multi_reduction <maximumf>, %26, %cst_18 [1] : vector<8x8xf32> to vector<8xf32>
    %28 = vector.shape_cast %27 : vector<8xf32> to vector<8x1xf32>
    %29 = vector.broadcast %28 : vector<8x1xf32> to vector<8x8xf32>
    %30 = arith.subf %26, %29 : vector<8x8xf32>
    %31 = math.exp %30 : vector<8x8xf32>
    %cst_19 = arith.constant dense<0.000000e+00> : vector<8xf32>
    %32 = vector.multi_reduction <add>, %31, %cst_19 [1] : vector<8x8xf32> to vector<8xf32>
    %33 = vector.shape_cast %32 : vector<8xf32> to vector<8x1xf32>
    %34 = tpu.reciprocal %33 {approx = true} : vector<8x1xf32> -> vector<8x1xf32>
    %35 = vector.broadcast %34 : vector<8x1xf32> to vector<8x8xf32>
    %36 = arith.mulf %31, %35 : vector<8x8xf32>
    %37 = arith.truncf %36 : vector<8x8xf32> to vector<8x8xbf16>
    %cst_20 = arith.constant dense<0.000000e+00> : vector<8x8xf32>
    %38 = tpu.matmul %37, %25, %cst_20 {dimension_numbers = #tpu.dot_dimension_numbers<[1], [0], [0], [1], [0, 0, 1, 1], [], []>} : vector<8x8xbf16>, vector<8x8xbf16>, vector<8x8xf32> -> vector<8x8xf32>
    %c0_21 = arith.constant 0 : index
    %c0_22 = arith.constant 0 : index
    %39 = vector.load %arg17[%c0_21, %c0_22] : memref<8x32xf32, #tpu.memory_space<vmem>>, vector<8x8xf32>
    tpu.vector_store %arg17[%c0_21, %c0_22], %38 {strides = array<i32>} : memref<8x32xf32, #tpu.memory_space<vmem>>, vector<8x8xf32>,
    %40 = vector.extract_strided_slice %20 {offsets = [0, 8], sizes = [8, 8], strides = [1, 1]} : vector<8x32xbf16> to vector<8x8xbf16>
    %41 = vector.extract_strided_slice %21 {offsets = [0, 8], sizes = [8, 8], strides = [1, 1]} : vector<8x32xbf16> to vector<8x8xbf16>
    %42 = vector.extract_strided_slice %22 {offsets = [0, 8], sizes = [8, 8], strides = [1, 1]} : vector<8x32xbf16> to vector<8x8xbf16>
    %cst_23 = arith.constant dense<0.000000e+00> : vector<8x8xf32>
    %43 = tpu.matmul %40, %41, %cst_23 {dimension_numbers = #tpu.dot_dimension_numbers<[1], [1], [0], [0], [0, 0, 1, 0], [], []>} : vector<8x8xbf16>, vector<8x8xbf16>, vector<8x8xf32> -> vector<8x8xf32>
    %cst_24 = arith.constant dense<0xFF800000> : vector<8xf32>
    %44 = vector.multi_reduction <maximumf>, %43, %cst_24 [1] : vector<8x8xf32> to vector<8xf32>
    %45 = vector.shape_cast %44 : vector<8xf32> to vector<8x1xf32>
    %46 = vector.broadcast %45 : vector<8x1xf32> to vector<8x8xf32>
    %47 = arith.subf %43, %46 : vector<8x8xf32>
    %48 = math.exp %47 : vector<8x8xf32>
    %cst_25 = arith.constant dense<0.000000e+00> : vector<8xf32>
    %49 = vector.multi_reduction <add>, %48, %cst_25 [1] : vector<8x8xf32> to vector<8xf32>
    %50 = vector.shape_cast %49 : vector<8xf32> to vector<8x1xf32>
    %51 = tpu.reciprocal %50 {approx = true} : vector<8x1xf32> -> vector<8x1xf32>
    %52 = vector.broadcast %51 : vector<8x1xf32> to vector<8x8xf32>
    %53 = arith.mulf %48, %52 : vector<8x8xf32>
    %54 = arith.truncf %53 : vector<8x8xf32> to vector<8x8xbf16>
    %cst_26 = arith.constant dense<0.000000e+00> : vector<8x8xf32>
    %55 = tpu.matmul %54, %42, %cst_26 {dimension_numbers = #tpu.dot_dimension_numbers<[1], [0], [0], [1], [0, 0, 1, 1], [], []>} : vector<8x8xbf16>, vector<8x8xbf16>, vector<8x8xf32> -> vector<8x8xf32>
    %c0_27 = arith.constant 0 : index
    %c8 = arith.constant 8 : index
    %56 = vector.load %arg17[%c0_27, %c8] : memref<8x32xf32, #tpu.memory_space<vmem>>, vector<8x8xf32>
    tpu.vector_store %arg17[%c0_27, %c8], %55 {strides = array<i32>} : memref<8x32xf32, #tpu.memory_space<vmem>>, vector<8x8xf32>,
    %57 = vector.extract_strided_slice %20 {offsets = [0, 16], sizes = [8, 8], strides = [1, 1]} : vector<8x32xbf16> to vector<8x8xbf16>
    %58 = vector.extract_strided_slice %21 {offsets = [0, 16], sizes = [8, 8], strides = [1, 1]} : vector<8x32xbf16> to vector<8x8xbf16>
    %59 = vector.extract_strided_slice %22 {offsets = [0, 16], sizes = [8, 8], strides = [1, 1]} : vector<8x32xbf16> to vector<8x8xbf16>
    %cst_28 = arith.constant dense<0.000000e+00> : vector<8x8xf32>
    %60 = tpu.matmul %57, %58, %cst_28 {dimension_numbers = #tpu.dot_dimension_numbers<[1], [1], [0], [0], [0, 0, 1, 0], [], []>} : vector<8x8xbf16>, vector<8x8xbf16>, vector<8x8xf32> -> vector<8x8xf32>
    %cst_29 = arith.constant dense<0xFF800000> : vector<8xf32>
    %61 = vector.multi_reduction <maximumf>, %60, %cst_29 [1] : vector<8x8xf32> to vector<8xf32>
    %62 = vector.shape_cast %61 : vector<8xf32> to vector<8x1xf32>
    %63 = vector.broadcast %62 : vector<8x1xf32> to vector<8x8xf32>
    %64 = arith.subf %60, %63 : vector<8x8xf32>
    %65 = math.exp %64 : vector<8x8xf32>
    %cst_30 = arith.constant dense<0.000000e+00> : vector<8xf32>
    %66 = vector.multi_reduction <add>, %65, %cst_30 [1] : vector<8x8xf32> to vector<8xf32>
    %67 = vector.shape_cast %66 : vector<8xf32> to vector<8x1xf32>
    %68 = tpu.reciprocal %67 {approx = true} : vector<8x1xf32> -> vector<8x1xf32>
    %69 = vector.broadcast %68 : vector<8x1xf32> to vector<8x8xf32>
    %70 = arith.mulf %65, %69 : vector<8x8xf32>
    %71 = arith.truncf %70 : vector<8x8xf32> to vector<8x8xbf16>
    %cst_31 = arith.constant dense<0.000000e+00> : vector<8x8xf32>
    %72 = tpu.matmul %71, %59, %cst_31 {dimension_numbers = #tpu.dot_dimension_numbers<[1], [0], [0], [1], [0, 0, 1, 1], [], []>} : vector<8x8xbf16>, vector<8x8xbf16>, vector<8x8xf32> -> vector<8x8xf32>
    %c0_32 = arith.constant 0 : index
    %c16 = arith.constant 16 : index
    %73 = vector.load %arg17[%c0_32, %c16] : memref<8x32xf32, #tpu.memory_space<vmem>>, vector<8x8xf32>
    tpu.vector_store %arg17[%c0_32, %c16], %72 {strides = array<i32>} : memref<8x32xf32, #tpu.memory_space<vmem>>, vector<8x8xf32>,
    %74 = vector.extract_strided_slice %20 {offsets = [0, 24], sizes = [8, 8], strides = [1, 1]} : vector<8x32xbf16> to vector<8x8xbf16>
    %75 = vector.extract_strided_slice %21 {offsets = [0, 24], sizes = [8, 8], strides = [1, 1]} : vector<8x32xbf16> to vector<8x8xbf16>
    %76 = vector.extract_strided_slice %22 {offsets = [0, 24], sizes = [8, 8], strides = [1, 1]} : vector<8x32xbf16> to vector<8x8xbf16>
    %cst_33 = arith.constant dense<0.000000e+00> : vector<8x8xf32>
    %77 = tpu.matmul %74, %75, %cst_33 {dimension_numbers = #tpu.dot_dimension_numbers<[1], [1], [0], [0], [0, 0, 1, 0], [], []>} : vector<8x8xbf16>, vector<8x8xbf16>, vector<8x8xf32> -> vector<8x8xf32>
    %cst_34 = arith.constant dense<0xFF800000> : vector<8xf32>
    %78 = vector.multi_reduction <maximumf>, %77, %cst_34 [1] : vector<8x8xf32> to vector<8xf32>
    %79 = vector.shape_cast %78 : vector<8xf32> to vector<8x1xf32>
    %80 = vector.broadcast %79 : vector<8x1xf32> to vector<8x8xf32>
    %81 = arith.subf %77, %80 : vector<8x8xf32>
    %82 = math.exp %81 : vector<8x8xf32>
    %cst_35 = arith.constant dense<0.000000e+00> : vector<8xf32>
    %83 = vector.multi_reduction <add>, %82, %cst_35 [1] : vector<8x8xf32> to vector<8xf32>
    %84 = vector.shape_cast %83 : vector<8xf32> to vector<8x1xf32>
    %85 = tpu.reciprocal %84 {approx = true} : vector<8x1xf32> -> vector<8x1xf32>
    %86 = vector.broadcast %85 : vector<8x1xf32> to vector<8x8xf32>
    %87 = arith.mulf %82, %86 : vector<8x8xf32>
    %88 = arith.truncf %87 : vector<8x8xf32> to vector<8x8xbf16>
    %cst_36 = arith.constant dense<0.000000e+00> : vector<8x8xf32>
    %89 = tpu.matmul %88, %76, %cst_36 {dimension_numbers = #tpu.dot_dimension_numbers<[1], [0], [0], [1], [0, 0, 1, 1], [], []>} : vector<8x8xbf16>, vector<8x8xbf16>, vector<8x8xf32> -> vector<8x8xf32>
    %c0_37 = arith.constant 0 : index
    %c24 = arith.constant 24 : index
    %90 = vector.load %arg17[%c0_37, %c24] : memref<8x32xf32, #tpu.memory_space<vmem>>, vector<8x8xf32>
    tpu.vector_store %arg17[%c0_37, %c24], %89 {strides = array<i32>} : memref<8x32xf32, #tpu.memory_space<vmem>>, vector<8x8xf32>,
    %c0_38 = arith.constant 0 : index
    %c0_39 = arith.constant 0 : index
    %91 = vector.load %arg17[%c0_38, %c0_39] : memref<8x32xf32, #tpu.memory_space<vmem>>, vector<8x32xf32>
    %92 = arith.truncf %91 : vector<8x32xf32> to vector<8x32xbf16>
    %c0_40 = arith.constant 0 : index
    %c0_41 = arith.constant 0 : index
    %93 = vector.load %arg8[%c0_40, %c0_41] : memref<32x32xbf16, #tpu.memory_space<vmem>>, vector<32x32xbf16>
    %cst_42 = arith.constant dense<0.000000e+00> : vector<8x32xf32>
    %94 = tpu.matmul %92, %93, %cst_42 {dimension_numbers = #tpu.dot_dimension_numbers<[1], [0], [0], [1], [0, 0, 1, 1], [], []>} : vector<8x32xbf16>, vector<32x32xbf16>, vector<8x32xf32> -> vector<8x32xf32>
    %c0_43 = arith.constant 0 : index
    %c0_44 = arith.constant 0 : index
    %95 = vector.load %arg9[%c0_43, %c0_44] : memref<1x32xf32, #tpu.memory_space<vmem>>, vector<1x32xf32>
    %96 = vector.broadcast %95 : vector<1x32xf32> to vector<8x32xf32>
    %97 = arith.addf %94, %96 : vector<8x32xf32>
    %98 = arith.addf %1, %97 : vector<8x32xf32>
    %c0_45 = arith.constant 0 : index
    %c0_46 = arith.constant 0 : index
    %99 = vector.load %arg14[%c0_45, %c0_46] : memref<1x32xf32, #tpu.memory_space<vmem>>, vector<1x32xf32>
    %c0_47 = arith.constant 0 : index
    %c0_48 = arith.constant 0 : index
    %100 = vector.load %arg15[%c0_47, %c0_48] : memref<1x32xf32, #tpu.memory_space<vmem>>, vector<1x32xf32>
    %cst_49 = arith.constant dense<0.000000e+00> : vector<8xf32>
    %101 = vector.multi_reduction <add>, %98, %cst_49 [1] : vector<8x32xf32> to vector<8xf32>
    %102 = vector.shape_cast %101 : vector<8xf32> to vector<8x1xf32>
    %cst_50 = arith.constant 3.200000e+01 : f32
    %103 = vector.broadcast %cst_50 : f32 to vector<8x1xf32>
    %104 = arith.divf %102, %103 : vector<8x1xf32>
    %105 = arith.mulf %98, %98 : vector<8x32xf32>
    %cst_51 = arith.constant dense<0.000000e+00> : vector<8xf32>
    %106 = vector.multi_reduction <add>, %105, %cst_51 [1] : vector<8x32xf32> to vector<8xf32>
    %107 = vector.shape_cast %106 : vector<8xf32> to vector<8x1xf32>
    %cst_52 = arith.constant 3.200000e+01 : f32
    %108 = vector.broadcast %cst_52 : f32 to vector<8x1xf32>
    %109 = arith.divf %107, %108 : vector<8x1xf32>
    %110 = arith.mulf %104, %104 : vector<8x1xf32>
    %111 = arith.subf %109, %110 : vector<8x1xf32>
    %cst_53 = arith.constant 9.99999974E-6 : f32
    %112 = vector.broadcast %cst_53 : f32 to vector<8x1xf32>
    %113 = arith.addf %111, %112 : vector<8x1xf32>
    %114 = math.rsqrt %113 : vector<8x1xf32>
    %115 = vector.broadcast %104 : vector<8x1xf32> to vector<8x32xf32>
    %116 = arith.subf %98, %115 : vector<8x32xf32>
    %117 = vector.broadcast %114 : vector<8x1xf32> to vector<8x32xf32>
    %118 = arith.mulf %116, %117 : vector<8x32xf32>
    %119 = vector.broadcast %99 : vector<1x32xf32> to vector<8x32xf32>
    %120 = arith.mulf %118, %119 : vector<8x32xf32>
    %121 = vector.broadcast %100 : vector<1x32xf32> to vector<8x32xf32>
    %122 = arith.addf %120, %121 : vector<8x32xf32>
    %123 = arith.truncf %122 : vector<8x32xf32> to vector<8x32xbf16>
    %c0_54 = arith.constant 0 : index
    %c0_55 = arith.constant 0 : index
    %124 = vector.load %arg10[%c0_54, %c0_55] : memref<32x64xbf16, #tpu.memory_space<vmem>>, vector<32x64xbf16>
    %cst_56 = arith.constant dense<0.000000e+00> : vector<8x64xf32>
    %125 = tpu.matmul %123, %124, %cst_56 {dimension_numbers = #tpu.dot_dimension_numbers<[1], [0], [0], [1], [0, 0, 1, 1], [], []>} : vector<8x32xbf16>, vector<32x64xbf16>, vector<8x64xf32> -> vector<8x64xf32>
    %c0_57 = arith.constant 0 : index
    %c0_58 = arith.constant 0 : index
    %126 = vector.load %arg11[%c0_57, %c0_58] : memref<1x64xf32, #tpu.memory_space<vmem>>, vector<1x64xf32>
    %127 = vector.broadcast %126 : vector<1x64xf32> to vector<8x64xf32>
    %128 = arith.addf %125, %127 : vector<8x64xf32>
    %cst_59 = arith.constant 0.000000e+00 : f32
    %129 = vector.broadcast %cst_59 : f32 to vector<8x64xf32>
    %130 = arith.maximumf %128, %129 : vector<8x64xf32>
    %131 = arith.truncf %130 : vector<8x64xf32> to vector<8x64xbf16>
    %c0_60 = arith.constant 0 : index
    %c0_61 = arith.constant 0 : index
    %132 = vector.load %arg12[%c0_60, %c0_61] : memref<64x32xbf16, #tpu.memory_space<vmem>>, vector<64x32xbf16>
    %cst_62 = arith.constant dense<0.000000e+00> : vector<8x32xf32>
    %133 = tpu.matmul %131, %132, %cst_62 {dimension_numbers = #tpu.dot_dimension_numbers<[1], [0], [0], [1], [0, 0, 1, 1], [], []>} : vector<8x64xbf16>, vector<64x32xbf16>, vector<8x32xf32> -> vector<8x32xf32>
    %c0_63 = arith.constant 0 : index
    %c0_64 = arith.constant 0 : index
    %134 = vector.load %arg13[%c0_63, %c0_64] : memref<1x32xf32, #tpu.memory_space<vmem>>, vector<1x32xf32>
    %135 = vector.broadcast %134 : vector<1x32xf32> to vector<8x32xf32>
    %136 = arith.addf %133, %135 : vector<8x32xf32>
    %137 = arith.addf %122, %136 : vector<8x32xf32>
    %c0_65 = arith.constant 0 : index
    %c0_66 = arith.constant 0 : index
    %138 = vector.load %arg14[%c0_65, %c0_66] : memref<1x32xf32, #tpu.memory_space<vmem>>, vector<1x32xf32>
    %c0_67 = arith.constant 0 : index
    %c0_68 = arith.constant 0 : index
    %139 = vector.load %arg15[%c0_67, %c0_68] : memref<1x32xf32, #tpu.memory_space<vmem>>, vector<1x32xf32>
    %cst_69 = arith.constant dense<0.000000e+00> : vector<8xf32>
    %140 = vector.multi_reduction <add>, %137, %cst_69 [1] : vector<8x32xf32> to vector<8xf32>
    %141 = vector.shape_cast %140 : vector<8xf32> to vector<8x1xf32>
    %cst_70 = arith.constant 3.200000e+01 : f32
    %142 = vector.broadcast %cst_70 : f32 to vector<8x1xf32>
    %143 = arith.divf %141, %142 : vector<8x1xf32>
    %144 = arith.mulf %137, %137 : vector<8x32xf32>
    %cst_71 = arith.constant dense<0.000000e+00> : vector<8xf32>
    %145 = vector.multi_reduction <add>, %144, %cst_71 [1] : vector<8x32xf32> to vector<8xf32>
    %146 = vector.shape_cast %145 : vector<8xf32> to vector<8x1xf32>
    %cst_72 = arith.constant 3.200000e+01 : f32
    %147 = vector.broadcast %cst_72 : f32 to vector<8x1xf32>
    %148 = arith.divf %146, %147 : vector<8x1xf32>
    %149 = arith.mulf %143, %143 : vector<8x1xf32>
    %150 = arith.subf %148, %149 : vector<8x1xf32>
    %cst_73 = arith.constant 9.99999974E-6 : f32
    %151 = vector.broadcast %cst_73 : f32 to vector<8x1xf32>
    %152 = arith.addf %150, %151 : vector<8x1xf32>
    %153 = math.rsqrt %152 : vector<8x1xf32>
    %154 = vector.broadcast %143 : vector<8x1xf32> to vector<8x32xf32>
    %155 = arith.subf %137, %154 : vector<8x32xf32>
    %156 = vector.broadcast %153 : vector<8x1xf32> to vector<8x32xf32>
    %157 = arith.mulf %155, %156 : vector<8x32xf32>
    %158 = vector.broadcast %138 : vector<1x32xf32> to vector<8x32xf32>
    %159 = arith.mulf %157, %158 : vector<8x32xf32>
    %160 = vector.broadcast %139 : vector<1x32xf32> to vector<8x32xf32>
    %161 = arith.addf %159, %160 : vector<8x32xf32>
    %c0_74 = arith.constant 0 : index
    %c0_75 = arith.constant 0 : index
    %c0_76 = arith.constant 0 : index
    %162 = vector.load %arg16[%c0_74, %c0_75, %c0_76] : memref<1x8x32xf32, #tpu.memory_space<vmem>>, vector<1x8x32xf32>
    %163 = vector.shape_cast %162 : vector<1x8x32xf32> to vector<8x32xf32>
    %164 = vector.shape_cast %161 : vector<8x32xf32> to vector<1x8x32xf32>
    tpu.vector_store %arg16[%c0_74, %c0_75, %c0_76], %164 {strides = array<i32>} : memref<1x8x32xf32, #tpu.memory_space<vmem>>, vector<1x8x32xf32>,
    return
  }
  func.func @transform_0(%arg0: i32) -> (i32, i32, i32) {
    %c0_i32 = arith.constant 0 : i32
    %c0_i32_0 = arith.constant 0 : i32
    %c0_i32_1 = arith.constant 0 : i32
    return %arg0, %c0_i32, %c0_i32_0 : i32, i32, i32
  }
  func.func @transform_1(%arg0: i32) -> (i32, i32) {
    %c0_i32 = arith.constant 0 : i32
    %c0_i32_0 = arith.constant 0 : i32
    %c0_i32_1 = arith.constant 0 : i32
    return %c0_i32, %c0_i32_0 : i32, i32
  }
  func.func @transform_2(%arg0: i32) -> (i32, i32) {
    %c0_i32 = arith.constant 0 : i32
    %c0_i32_0 = arith.constant 0 : i32
    %c0_i32_1 = arith.constant 0 : i32
    return %c0_i32, %c0_i32_0 : i32, i32
  }
  func.func @transform_3(%arg0: i32) -> (i32, i32) {
    %c0_i32 = arith.constant 0 : i32
    %c0_i32_0 = arith.constant 0 : i32
    %c0_i32_1 = arith.constant 0 : i32
    return %c0_i32, %c0_i32_0 : i32, i32
  }
  func.func @transform_4(%arg0: i32) -> (i32, i32) {
    %c0_i32 = arith.constant 0 : i32
    %c0_i32_0 = arith.constant 0 : i32
    %c0_i32_1 = arith.constant 0 : i32
    return %c0_i32, %c0_i32_0 : i32, i32
  }
  func.func @transform_5(%arg0: i32) -> (i32, i32) {
    %c0_i32 = arith.constant 0 : i32
    %c0_i32_0 = arith.constant 0 : i32
    %c0_i32_1 = arith.constant 0 : i32
    return %c0_i32, %c0_i32_0 : i32, i32
  }
  func.func @transform_6(%arg0: i32) -> (i32, i32) {
    %c0_i32 = arith.constant 0 : i32
    %c0_i32_0 = arith.constant 0 : i32
    %c0_i32_1 = arith.constant 0 : i32
    return %c0_i32, %c0_i32_0 : i32, i32
  }
  func.func @transform_7(%arg0: i32) -> (i32, i32) {
    %c0_i32 = arith.constant 0 : i32
    %c0_i32_0 = arith.constant 0 : i32
    %c0_i32_1 = arith.constant 0 : i32
    return %c0_i32, %c0_i32_0 : i32, i32
  }
  func.func @transform_8(%arg0: i32) -> (i32, i32) {
    %c0_i32 = arith.constant 0 : i32
    %c0_i32_0 = arith.constant 0 : i32
    %c0_i32_1 = arith.constant 0 : i32
    return %c0_i32, %c0_i32_0 : i32, i32
  }
  func.func @transform_9(%arg0: i32) -> (i32, i32) {
    %c0_i32 = arith.constant 0 : i32
    %c0_i32_0 = arith.constant 0 : i32
    %c0_i32_1 = arith.constant 0 : i32
    return %c0_i32, %c0_i32_0 : i32, i32
  }
  func.func @transform_10(%arg0: i32) -> (i32, i32) {
    %c0_i32 = arith.constant 0 : i32
    %c0_i32_0 = arith.constant 0 : i32
    %c0_i32_1 = arith.constant 0 : i32
    return %c0_i32, %c0_i32_0 : i32, i32
  }
  func.func @transform_11(%arg0: i32) -> (i32, i32) {
    %c0_i32 = arith.constant 0 : i32
    %c0_i32_0 = arith.constant 0 : i32
    %c0_i32_1 = arith.constant 0 : i32
    return %c0_i32, %c0_i32_0 : i32, i32
  }
  func.func @transform_12(%arg0: i32) -> (i32, i32) {
    %c0_i32 = arith.constant 0 : i32
    %c0_i32_0 = arith.constant 0 : i32
    %c0_i32_1 = arith.constant 0 : i32
    return %c0_i32, %c0_i32_0 : i32, i32
  }
  func.func @transform_13(%arg0: i32) -> (i32, i32) {
    %c0_i32 = arith.constant 0 : i32
    %c0_i32_0 = arith.constant 0 : i32
    %c0_i32_1 = arith.constant 0 : i32
    return %c0_i32, %c0_i32_0 : i32, i32
  }
  func.func @transform_14(%arg0: i32) -> (i32, i32) {
    %c0_i32 = arith.constant 0 : i32
    %c0_i32_0 = arith.constant 0 : i32
    %c0_i32_1 = arith.constant 0 : i32
    return %c0_i32, %c0_i32_0 : i32, i32
  }
  func.func @transform_15(%arg0: i32) -> (i32, i32, i32) {
    %c0_i32 = arith.constant 0 : i32
    %c0_i32_0 = arith.constant 0 : i32
    %c0_i32_1 = arith.constant 0 : i32
    return %arg0, %c0_i32, %c0_i32_0 : i32, i32, i32
  }
}

</mosaic_0001>

<bundles_post_ra>
// kernel: tpu_custom_call.1
= control target key start
LH: loop header
LB: loop body
LE: loop exit
PB: predicated region body
PF: predicated region fallthrough
CT: control target
= control target key end

     0   :  { %s3515_s0 = inlined_call_operand.hbm [shape: f32[2,8,32], index: 0, kind: input, shape index: {}]   ;;  %s3516_s1 = inlined_call_operand.hbm [shape: bf16[32,32], index: 1, kind: input, shape index: {}]   ;;  %s3517_s2 = inlined_call_operand.hbm [shape: f32[1,32], index: 2, kind: input, shape index: {}]   ;;  %s3518_s3 = inlined_call_operand.hbm [shape: bf16[32,32], index: 3, kind: input, shape index: {}]   ;;  %s3519_s4 = inlined_call_operand.hbm [shape: f32[1,32], index: 4, kind: input, shape index: {}]   ;;  %s3520_s5 = inlined_call_operand.hbm [shape: bf16[32,32], index: 5, kind: input, shape index: {}]   ;;  %s3521_s6 = inlined_call_operand.hbm [shape: f32[1,32], index: 6, kind: input, shape index: {}]   ;;  %s3522_s7 = inlined_call_operand.hbm [shape: bf16[32,32], index: 7, kind: input, shape index: {}]   ;;  %s3523_s8 = inlined_call_operand.hbm [shape: f32[1,32], index: 8, kind: input, shape index: {}]   ;;  %s3524_s9 = inlined_call_operand.hbm [shape: bf16[32,64], index: 9, kind: input, shape index: {}]   ;;  %s3525_s10 = inlined_call_operand.hbm [shape: f32[1,64], index: 10, kind: input, shape index: {}]   ;;  %s3526_s11 = inlined_call_operand.hbm [shape: bf16[64,32], index: 11, kind: input, shape index: {}]   ;;  %s3527_s12 = inlined_call_operand.hbm [shape: f32[1,32], index: 12, kind: input, shape index: {}]   ;;  %s3528_s13 = inlined_call_operand.hbm [shape: f32[1,32], index: 13, kind: input, shape index: {}]   ;;  %s3529_s14 = inlined_call_operand.hbm [shape: f32[1,32], index: 14, kind: input, shape index: {}]   ;;  %s3530_s15 = inlined_call_operand.hbm [shape: f32[2,8,32], index: 15, kind: output, shape index: {}]  }
   0x1   :  { %3542 = sst [smem:[#allocation42_spill]] %s3515_s0 }
   0x2   :  { %3543 = sst [smem:[#allocation43_spill]] %s3516_s1 }
   0x3   :  { %3544 = sst [smem:[#allocation44_spill]] %s3517_s2 }
   0x4   :  { %3545 = sst [smem:[#allocation45_spill]] %s3530_s15 }
   0x5   :  { %20 = vsyncpa [#allocation4], 0 }
   0x6   :  { %22 = vsyncpa [#allocation4 + $0x1], 0 }
   0x7   :  { %23 = vsyncpa [#allocation7], 0 }
   0x8   :  { %24 = vsyncpa [#allocation10], 0 }
   0x9   :  { %25 = vsyncpa [#allocation13], 0 }
   0xa   :  { %26 = vsyncpa [#allocation16], 0 }
   0xb   :  { %27 = vsyncpa [#allocation19], 0 }
   0xc   :  { %28 = vsyncpa [#allocation22], 0 }
   0xd   :  { %29 = vsyncpa [#allocation25], 0 }
   0xe   :  { %30 = vsyncpa [#allocation5], 0 }
   0xf   :  { %32 = vsyncpa [#allocation5 + $0x1], 0  ;;  %s2911_s18 = smov 0   ;;  %s2913_s19 = smov 0  }
  0x10   :  { %s2915_s20 = smov 0   ;;  %s2917_s21 = smov 0  }
  0x11 LB: > { %3546 = sst [smem:[#allocation37_spill]] %s2791_s18  ;;  %s2805_s22 = smov [#allocation6]   ;;  %s2803_s21 = sphi %s2917_s21, %s3595_s21   ;;  %s2799_s20 = sphi %s2915_s20, %s3594_s20   ;;  %s2795_s19 = sphi %s2913_s19, %s3591_s19   ;;  %s2791_s18 = sphi %s2911_s18, %s3593_s18  }
  0x12   : > { %3547 = sst [smem:[#allocation38_spill]] %s2795_s19  ;;  %s401_s23 = sshll.u32 %s2805_s22, 4  ;;  %s2937_s23 = int_to_ptr.vmem [resolvable:$true] %s401_s23 }
  0x13   : > { %3548 = sst [smem:[#allocation39_spill]] %s2799_s20  ;;  %s2932_s24 = sadd.s32 4294967295, %s2803_s21  }
  0x14   : > { %3549 = sst [smem:[#allocation40_spill]] %s2932_s24  ;;  %p1845_p0 = scmp.ge.s32.totalorder %s2803_s21, 1 }
  0x15   : > { %p3539_p1 = scmp.eq.s32.totalorder %s2932_s24, 0  ;;  %p389_p2 = scmp.lt.s32.totalorder %s2803_s21, 3 }
  0x16   : > { %s2806_s26 = smov [#allocation9]   ;;  %s2807_s29 = smov [#allocation12]  }
  0x17   : > { %p2939_p3 = pnand %p1845_p0, %p389_p2  ;;  %s425_s27 = sshll.u32 %s2806_s26, 4  ;;  %s2952_s27 = int_to_ptr.vmem [resolvable:$true] %s425_s27 }
  0x18   : > { %s449_s30 = sshll.u32 %s2807_s29, 4  ;;  %s3553_s1 = sld [smem:[#allocation43_spill]]  ;;  %s2954_s30 = int_to_ptr.vmem [resolvable:$true] %s449_s30 }
  0x19   : > { %s3550_s25 = scalar_select %p2939_p3, 1, 0 }
  0x1a   : > { %p2116_p5 = pneg %p2939_p3 }
  0x1b   : > { %3551 = sst [smem:[#allocation41_spill]] %s3550_s25 }
  0x1c   : > { %p2948_p6 = pnand %p2116_p5, %p3539_p1 }
  0x1e   : > { %s2287_s22 = scalar_lea.hbm %s3553_s1, 256  ;;  %p2964_p8 = pneg %p2948_p6 }
  0x1f   : > { %p2288_p7 = scmp.ne.s32.totalorder %s3553_s1, %s2287_s22  ;;  %p2294_p11 = scmp.lt.u32.totalorder %s2287_s22, %s3553_s1 }
  0x21   : > { %p2290_p9 = pnand %p2964_p8, %p2288_p7 }
  0x23   : > { %p2291_p10 = pneg %p2290_p9 }
  0x25   : > { %p2296_p12 = pnand %p2294_p11, %p2291_p10 }
  0x27   : > { %2299 = shalt.err (!%p2296_p12)
}
  0x28   : > { %s2300_s15 = scalar_lea.vmem %s2937_s23, 256  ;;  %p2308_p5 = scmp.lt.s32.totalorder %s2937_s23, %s2937_s23 }
  0x29   : > { %p2301_p13 = scmp.ne.s32.totalorder %s2937_s23, %s2300_s15  ;;  %p2309_p4 = scmp.lt.s32.totalorder %s2300_s15, %s2300_s15 }
  0x2b   : > { %p2303_p0 = pnand %p2301_p13, %p2964_p8  ;;  %p2310_p7 = por %p2309_p4, %p2308_p5 }
  0x2d   : > { %p2304_p2 = pneg %p2303_p0 }
  0x2f   : > { %p2311_p9 = pnand %p2310_p7, %p2304_p2 }
  0x31   : > { %2314 = shalt.err (!%p2311_p9)
}
  0x32   : > { %s2808_s25 = smov 64   ;;  %s2809_s0 = smov 4  }
  0x33   : > { %2119 = dma.hbm_to_vmem [thread:$0]  (!%p2948_p6), %s3553_s1, 256, %s2937_s23, [#allocation7], %s2808_s25, %s2808_s25, %s2809_s0  }
  0x34   : > { %s2315_s15 = scalar_lea.hbm %s3518_s3, 256 }
  0x35   : > { %p2316_p4 = scmp.ne.s32.totalorder %s3518_s3, %s2315_s15  ;;  %p2322_p12 = scmp.lt.u32.totalorder %s2315_s15, %s3518_s3 }
  0x37   : > { %p2318_p10 = pnand %p2316_p4, %p2964_p8 }
  0x39   : > { %p2319_p11 = pneg %p2318_p10 }
  0x3b   : > { %p2324_p13 = pnand %p2322_p12, %p2319_p11 }
  0x3d   : > { %2327 = shalt.err (!%p2324_p13)
}
  0x3e   : > { %s2328_s23 = scalar_lea.vmem %s2952_s27, 256  ;;  %p2336_p7 = scmp.lt.s32.totalorder %s2952_s27, %s2952_s27 }
  0x3f   : > { %p2329_p0 = scmp.ne.s32.totalorder %s2952_s27, %s2328_s23  ;;  %p2337_p9 = scmp.lt.s32.totalorder %s2328_s23, %s2328_s23 }
  0x41   : > { %p2331_p2 = pnand %p2329_p0, %p2964_p8  ;;  %p2338_p4 = por %p2337_p9, %p2336_p7 }
  0x43   : > { %p2332_p5 = pneg %p2331_p2 }
  0x45   : > { %p2339_p10 = pnand %p2338_p4, %p2332_p5 }
  0x47   : > { %2342 = shalt.err (!%p2339_p10)
}
  0x48   : > { %2125 = dma.hbm_to_vmem [thread:$0]  (!%p2948_p6), %s3518_s3, 256, %s2952_s27, [#allocation10], %s2808_s25, %s2808_s25, %s2809_s0  }
  0x49   : > { %s2343_s16 = scalar_lea.hbm %s3520_s5, 256 }
  0x4a   : > { %p2344_p11 = scmp.ne.s32.totalorder %s3520_s5, %s2343_s16  ;;  %p2350_p0 = scmp.lt.u32.totalorder %s2343_s16, %s3520_s5 }
  0x4c   : > { %p2346_p12 = pnand %p2344_p11, %p2964_p8 }
  0x4e   : > { %p2347_p13 = pneg %p2346_p12 }
  0x50   : > { %p2352_p2 = pnand %p2350_p0, %p2347_p13 }
  0x52   : > { %2355 = shalt.err (!%p2352_p2)
}
  0x53   : > { %s2356_s27 = scalar_lea.vmem %s2954_s30, 256  ;;  %p2364_p4 = scmp.lt.s32.totalorder %s2954_s30, %s2954_s30 }
  0x54   : > { %p2357_p5 = scmp.ne.s32.totalorder %s2954_s30, %s2356_s27  ;;  %p2365_p10 = scmp.lt.s32.totalorder %s2356_s27, %s2356_s27 }
  0x56   : > { %p2359_p7 = pnand %p2357_p5, %p2964_p8  ;;  %p2366_p11 = por %p2365_p10, %p2364_p4 }
  0x58   : > { %p2360_p9 = pneg %p2359_p7 }
  0x5a   : > { %p2367_p12 = pnand %p2366_p11, %p2360_p9 }
  0x5c   : > { %2370 = shalt.err (!%p2367_p12)
}
  0x5d   : > { %2131 = dma.hbm_to_vmem [thread:$0]  (!%p2948_p6), %s3520_s5, 256, %s2954_s30, [#allocation13], %s2808_s25, %s2808_s25, %s2809_s0  }
  0x5e   : > { %s2810_s19 = smov [#allocation15]   ;;  %s2811_s24 = smov [#allocation18]  }
  0x5f   : > { %s473_s20 = sshll.u32 %s2810_s19, 4  ;;  %s497_s16 = sshll.u32 %s2811_s24, 4  ;;  %s474_s20 = int_to_ptr.vmem [resolvable:$true] %s473_s20  ;;  %s498_s16 = int_to_ptr.vmem [resolvable:$true] %s497_s16 }
  0x60   : > { %s2371_s29 = scalar_lea.hbm %s3522_s7, 256 }
  0x61   : > { %p2372_p13 = scmp.ne.s32.totalorder %s3522_s7, %s2371_s29  ;;  %p2378_p5 = scmp.lt.u32.totalorder %s2371_s29, %s3522_s7 }
  0x63   : > { %p2374_p0 = pnand %p2372_p13, %p2964_p8 }
  0x65   : > { %p2375_p2 = pneg %p2374_p0 }
  0x67   : > { %p2380_p7 = pnand %p2378_p5, %p2375_p2 }
  0x69   : > { %2383 = shalt.err (!%p2380_p7)
}
  0x6a   : > { %s2384_s30 = scalar_lea.vmem %s474_s20, 256  ;;  %p2392_p11 = scmp.lt.s32.totalorder %s474_s20, %s474_s20 }
  0x6b   : > { %p2385_p9 = scmp.ne.s32.totalorder %s474_s20, %s2384_s30  ;;  %p2393_p12 = scmp.lt.s32.totalorder %s2384_s30, %s2384_s30 }
  0x6d   : > { %p2387_p4 = pnand %p2385_p9, %p2964_p8  ;;  %p2394_p1 = por %p2393_p12, %p2392_p11 }
  0x6f   : > { %p2388_p10 = pneg %p2387_p4 }
  0x71   : > { %p2395_p3 = pnand %p2394_p1, %p2388_p10 }
  0x73   : > { %2398 = shalt.err (!%p2395_p3)
}
  0x74   : > { %2137 = dma.hbm_to_vmem [thread:$0]  (!%p2948_p6), %s3522_s7, 256, %s474_s20, [#allocation16], %s2808_s25, %s2808_s25, %s2809_s0  }
  0x75   : > { %s2399_s17 = scalar_lea.hbm %s3524_s9, 256 }
  0x76   : > { %p2400_p1 = scmp.ne.s32.totalorder %s3524_s9, %s2399_s17  ;;  %p2406_p0 = scmp.lt.u32.totalorder %s2399_s17, %s3524_s9 }
  0x78   : > { %p2402_p3 = pnand %p2400_p1, %p2964_p8 }
  0x7a   : > { %p2403_p13 = pneg %p2402_p3 }
  0x7c   : > { %p2408_p2 = pnand %p2406_p0, %p2403_p13 }
  0x7e   : > { %2411 = shalt.err (!%p2408_p2)
}
  0x7f   : > { %s2412_s23 = scalar_lea.vmem %s498_s16, 256  ;;  %p2420_p4 = scmp.lt.s32.totalorder %s498_s16, %s498_s16 }
  0x80   : > { %p2413_p5 = scmp.ne.s32.totalorder %s498_s16, %s2412_s23  ;;  %p2421_p10 = scmp.lt.s32.totalorder %s2412_s23, %s2412_s23 }
  0x82   : > { %p2415_p7 = pnand %p2413_p5, %p2964_p8  ;;  %p2422_p11 = por %p2421_p10, %p2420_p4 }
  0x84   : > { %p2416_p9 = pneg %p2415_p7 }
  0x86   : > { %p2423_p12 = pnand %p2422_p11, %p2416_p9 }
  0x88   : > { %2426 = shalt.err (!%p2423_p12)
}
  0x89   : > { %2143 = dma.hbm_to_vmem [thread:$0]  (!%p2948_p6), %s3524_s9, 256, %s498_s16, [#allocation19], %s2808_s25, %s2808_s25, %s2809_s0  }
  0x8a   : > { %s2812_s1 = smov [#allocation21]   ;;  %s2813_s19 = smov [#allocation24]  }
  0x8b   : > { %s521_s18 = sshll.u32 %s2812_s1, 4  ;;  %s546_s24 = sshll.u32 %s2813_s19, 4  ;;  %s522_s18 = int_to_ptr.vmem [resolvable:$true] %s521_s18  ;;  %s547_s24 = int_to_ptr.vmem [resolvable:$true] %s546_s24 }
  0x8c   : > { %s2427_s29 = scalar_lea.hbm %s3526_s11, 512 }
  0x8d   : > { %p2428_p1 = scmp.ne.s32.totalorder %s3526_s11, %s2427_s29  ;;  %p2434_p0 = scmp.lt.u32.totalorder %s2427_s29, %s3526_s11 }
  0x8f   : > { %p2430_p3 = pnand %p2428_p1, %p2964_p8 }
  0x91   : > { %p2431_p13 = pneg %p2430_p3 }
  0x93   : > { %p2436_p2 = pnand %p2434_p0, %p2431_p13 }
  0x95   : > { %2439 = shalt.err (!%p2436_p2)
}
  0x96   : > { %s2440_s16 = scalar_lea.vmem %s522_s18, 512  ;;  %p2448_p4 = scmp.lt.s32.totalorder %s522_s18, %s522_s18 }
  0x97   : > { %p2441_p5 = scmp.ne.s32.totalorder %s522_s18, %s2440_s16  ;;  %p2449_p10 = scmp.lt.s32.totalorder %s2440_s16, %s2440_s16 }
  0x99   : > { %p2443_p7 = pnand %p2441_p5, %p2964_p8  ;;  %p2450_p11 = por %p2449_p10, %p2448_p4 }
  0x9b   : > { %p2444_p9 = pneg %p2443_p7 }
  0x9d   : > { %p2451_p12 = pnand %p2450_p11, %p2444_p9 }
  0x9f   : > { %2454 = shalt.err (!%p2451_p12)
}
  0xa0   : > { %2149 = dma.hbm_to_vmem [thread:$0]  (!%p2948_p6), %s3526_s11, 512, %s522_s18, [#allocation22], %s2808_s25, %s2808_s25, %s2809_s0  }
  0xa1   : > { %s2455_s22 = scalar_lea.hbm %s3528_s13, 16 }
  0xa2   : > { %p2456_p1 = scmp.ne.s32.totalorder %s3528_s13, %s2455_s22  ;;  %p2462_p0 = scmp.lt.u32.totalorder %s2455_s22, %s3528_s13 }
  0xa4   : > { %p2458_p3 = pnand %p2456_p1, %p2964_p8 }
  0xa6   : > { %p2459_p13 = pneg %p2458_p3 }
  0xa8   : > { %p2464_p2 = pnand %p2462_p0, %p2459_p13 }
  0xaa   : > { %2467 = shalt.err (!%p2464_p2)
}
  0xab   : > { %s2468_s20 = scalar_lea.vmem %s547_s24, 16  ;;  %s2475_s25 = scalar_lea.vmem %s547_s24, 32 }
  0xac   : > { %p2469_p5 = scmp.ne.s32.totalorder %s547_s24, %s2468_s20  ;;  %p2476_p4 = scmp.lt.s32.totalorder %s547_s24, %s547_s24 }
  0xad   : > { %p2477_p10 = scmp.lt.s32.totalorder %s2475_s25, %s2468_s20 }
  0xae   : > { %p2471_p7 = pnand %p2469_p5, %p2964_p8 }
  0xaf   : > { %p2478_p11 = por %p2477_p10, %p2476_p4 }
  0xb0   : > { %p2472_p9 = pneg %p2471_p7 }
  0xb2   : > { %p2479_p12 = pnand %p2478_p11, %p2472_p9 }
  0xb4   : > { %2482 = shalt.err (!%p2479_p12)
}
  0xb5   : > { %2155 = dma.hbm_to_vmem [thread:$0]  (!%p2948_p6), %s3528_s13, 16, %s547_s24, [#allocation25]  }
  0xb6   : > { %s2814_s16 = smov [#allocation8]   ;;  %s2815_s1 = smov [#allocation11]  }
  0xb7   : > { %s415_s30 = sshll.u32 %s2814_s16, 4  ;;  %s439_s19 = sshll.u32 %s2815_s1, 4  ;;  %s416_s30 = int_to_ptr.vmem [resolvable:$true] %s415_s30  ;;  %s440_s19 = int_to_ptr.vmem [resolvable:$true] %s439_s19 }
  0xb8   : > { %s3555_s2 = sld [smem:[#allocation44_spill]] }
  0xbe   : > { %s2483_s29 = scalar_lea.hbm %s3555_s2, 16 }
  0xbf   : > { %p2484_p1 = scmp.ne.s32.totalorder %s3555_s2, %s2483_s29  ;;  %p2490_p0 = scmp.lt.u32.totalorder %s2483_s29, %s3555_s2 }
  0xc1   : > { %p2486_p3 = pnand %p2484_p1, %p2964_p8 }
  0xc3   : > { %p2487_p13 = pneg %p2486_p3 }
  0xc5   : > { %p2492_p2 = pnand %p2490_p0, %p2487_p13 }
  0xc7   : > { %2495 = shalt.err (!%p2492_p2)
}
  0xc8   : > { %s2496_s24 = scalar_lea.vmem %s416_s30, 16  ;;  %s2503_s25 = scalar_lea.vmem %s416_s30, 32 }
  0xc9   : > { %p2497_p5 = scmp.ne.s32.totalorder %s416_s30, %s2496_s24  ;;  %p2504_p4 = scmp.lt.s32.totalorder %s416_s30, %s416_s30 }
  0xca   : > { %p2505_p10 = scmp.lt.s32.totalorder %s2503_s25, %s2496_s24 }
  0xcb   : > { %p2499_p7 = pnand %p2497_p5, %p2964_p8 }
  0xcc   : > { %p2506_p11 = por %p2505_p10, %p2504_p4 }
  0xcd   : > { %p2500_p9 = pneg %p2499_p7 }
  0xcf   : > { %p2507_p12 = pnand %p2506_p11, %p2500_p9 }
  0xd1   : > { %2510 = shalt.err (!%p2507_p12)
}
  0xd2   : > { %2122 = dma.hbm_to_vmem [thread:$0]  (!%p2948_p6), %s3555_s2, 16, %s416_s30, [#allocation7]  }
  0xd3   : > { %s2511_s17 = scalar_lea.hbm %s3519_s4, 16 }
  0xd4   : > { %p2512_p1 = scmp.ne.s32.totalorder %s3519_s4, %s2511_s17  ;;  %p2518_p0 = scmp.lt.u32.totalorder %s2511_s17, %s3519_s4 }
  0xd6   : > { %p2514_p3 = pnand %p2512_p1, %p2964_p8 }
  0xd8   : > { %p2515_p13 = pneg %p2514_p3 }
  0xda   : > { %p2520_p2 = pnand %p2518_p0, %p2515_p13 }
  0xdc   : > { %2523 = shalt.err (!%p2520_p2)
}
  0xdd   : > { %s2524_s23 = scalar_lea.vmem %s440_s19, 16  ;;  %s2531_s30 = scalar_lea.vmem %s440_s19, 32 }
  0xde   : > { %p2525_p5 = scmp.ne.s32.totalorder %s440_s19, %s2524_s23  ;;  %p2532_p4 = scmp.lt.s32.totalorder %s440_s19, %s440_s19 }
  0xdf   : > { %p2533_p10 = scmp.lt.s32.totalorder %s2531_s30, %s2524_s23 }
  0xe0   : > { %p2527_p7 = pnand %p2525_p5, %p2964_p8 }
  0xe1   : > { %p2534_p11 = por %p2533_p10, %p2532_p4 }
  0xe2   : > { %p2528_p9 = pneg %p2527_p7 }
  0xe4   : > { %p2535_p12 = pnand %p2534_p11, %p2528_p9 }
  0xe6   : > { %2538 = shalt.err (!%p2535_p12)
}
  0xe7   : > { %2128 = dma.hbm_to_vmem [thread:$0]  (!%p2948_p6), %s3519_s4, 16, %s440_s19, [#allocation10]  }
  0xe8   : > { %s2816_s25 = smov [#allocation14]   ;;  %s2817_s18 = smov [#allocation17]  }
  0xe9   : > { %s463_s0 = sshll.u32 %s2816_s25, 4  ;;  %s487_s16 = sshll.u32 %s2817_s18, 4  ;;  %s464_s0 = int_to_ptr.vmem [resolvable:$true] %s463_s0  ;;  %s488_s16 = int_to_ptr.vmem [resolvable:$true] %s487_s16 }
  0xea   : > { %s2539_s22 = scalar_lea.hbm %s3521_s6, 16 }
  0xeb   : > { %p2540_p1 = scmp.ne.s32.totalorder %s3521_s6, %s2539_s22  ;;  %p2546_p0 = scmp.lt.u32.totalorder %s2539_s22, %s3521_s6 }
  0xed   : > { %p2542_p3 = pnand %p2540_p1, %p2964_p8 }
  0xef   : > { %p2543_p13 = pneg %p2542_p3 }
  0xf1   : > { %p2548_p2 = pnand %p2546_p0, %p2543_p13 }
  0xf3   : > { %2551 = shalt.err (!%p2548_p2)
}
  0xf4   : > { %s2552_s19 = scalar_lea.vmem %s464_s0, 16  ;;  %s2559_s30 = scalar_lea.vmem %s464_s0, 32 }
  0xf5   : > { %p2553_p5 = scmp.ne.s32.totalorder %s464_s0, %s2552_s19  ;;  %p2560_p4 = scmp.lt.s32.totalorder %s464_s0, %s464_s0 }
  0xf6   : > { %p2561_p10 = scmp.lt.s32.totalorder %s2559_s30, %s2552_s19 }
  0xf7   : > { %p2555_p7 = pnand %p2553_p5, %p2964_p8 }
  0xf8   : > { %p2562_p11 = por %p2561_p10, %p2560_p4 }
  0xf9   : > { %p2556_p9 = pneg %p2555_p7 }
  0xfb   : > { %p2563_p12 = pnand %p2562_p11, %p2556_p9 }
  0xfd   : > { %2566 = shalt.err (!%p2563_p12)
}
  0xfe   : > { %2134 = dma.hbm_to_vmem [thread:$0]  (!%p2948_p6), %s3521_s6, 16, %s464_s0, [#allocation13]  }
  0xff   : > { %s2567_s1 = scalar_lea.hbm %s3523_s8, 16 }
 0x100   : > { %p2568_p1 = scmp.ne.s32.totalorder %s3523_s8, %s2567_s1  ;;  %p2574_p0 = scmp.lt.u32.totalorder %s2567_s1, %s3523_s8 }
 0x102   : > { %p2570_p3 = pnand %p2568_p1, %p2964_p8 }
 0x104   : > { %p2571_p13 = pneg %p2570_p3 }
 0x106   : > { %p2576_p2 = pnand %p2574_p0, %p2571_p13 }
 0x108   : > { %2579 = shalt.err (!%p2576_p2)
}
 0x109   : > { %s2580_s27 = scalar_lea.vmem %s488_s16, 16  ;;  %s2587_s0 = scalar_lea.vmem %s488_s16, 32 }
 0x10a   : > { %p2581_p5 = scmp.ne.s32.totalorder %s488_s16, %s2580_s27  ;;  %p2588_p4 = scmp.lt.s32.totalorder %s488_s16, %s488_s16 }
 0x10b   : > { %p2589_p10 = scmp.lt.s32.totalorder %s2587_s0, %s2580_s27 }
 0x10c   : > { %p2583_p7 = pnand %p2581_p5, %p2964_p8 }
 0x10d   : > { %p2590_p11 = por %p2589_p10, %p2588_p4 }
 0x10e   : > { %p2584_p9 = pneg %p2583_p7 }
 0x110   : > { %p2591_p12 = pnand %p2590_p11, %p2584_p9 }
 0x112   : > { %2594 = shalt.err (!%p2591_p12)
}
 0x113   : > { %2140 = dma.hbm_to_vmem [thread:$0]  (!%p2948_p6), %s3523_s8, 16, %s488_s16, [#allocation16]  }
 0x114   : > { %s2818_s30 = smov [#allocation20]   ;;  %s2819_s24 = smov [#allocation23]  }
 0x115   : > { %s511_s20 = sshll.u32 %s2818_s30, 4  ;;  %s535_s25 = sshll.u32 %s2819_s24, 4  ;;  %s512_s20 = int_to_ptr.vmem [resolvable:$true] %s511_s20  ;;  %s536_s25 = int_to_ptr.vmem [resolvable:$true] %s535_s25 }
 0x116   : > { %s2595_s17 = scalar_lea.hbm %s3525_s10, 16 }
 0x117   : > { %p2596_p1 = scmp.ne.s32.totalorder %s3525_s10, %s2595_s17  ;;  %p2602_p0 = scmp.lt.u32.totalorder %s2595_s17, %s3525_s10 }
 0x119   : > { %p2598_p3 = pnand %p2596_p1, %p2964_p8 }
 0x11b   : > { %p2599_p13 = pneg %p2598_p3 }
 0x11d   : > { %p2604_p2 = pnand %p2602_p0, %p2599_p13 }
 0x11f   : > { %2607 = shalt.err (!%p2604_p2)
}
 0x120   : > { %s2608_s16 = scalar_lea.vmem %s512_s20, 16  ;;  %s2615_s0 = scalar_lea.vmem %s512_s20, 32 }
 0x121   : > { %p2609_p5 = scmp.ne.s32.totalorder %s512_s20, %s2608_s16  ;;  %p2616_p4 = scmp.lt.s32.totalorder %s512_s20, %s512_s20 }
 0x122   : > { %p2617_p10 = scmp.lt.s32.totalorder %s2615_s0, %s2608_s16 }
 0x123   : > { %p2611_p7 = pnand %p2609_p5, %p2964_p8 }
 0x124   : > { %p2618_p11 = por %p2617_p10, %p2616_p4 }
 0x125   : > { %p2612_p9 = pneg %p2611_p7 }
 0x127   : > { %p2619_p12 = pnand %p2618_p11, %p2612_p9 }
 0x129   : > { %2622 = shalt.err (!%p2619_p12)
}
 0x12a   : > { %2146 = dma.hbm_to_vmem [thread:$0]  (!%p2948_p6), %s3525_s10, 16, %s512_s20, [#allocation19]  }
 0x12b   : > { %s2623_s18 = scalar_lea.hbm %s3527_s12, 16 }
 0x12c   : > { %p2624_p1 = scmp.ne.s32.totalorder %s3527_s12, %s2623_s18  ;;  %p2630_p0 = scmp.lt.u32.totalorder %s2623_s18, %s3527_s12 }
 0x12e   : > { %p2626_p3 = pnand %p2624_p1, %p2964_p8 }
 0x130   : > { %p2627_p13 = pneg %p2626_p3 }
 0x132   : > { %p2632_p2 = pnand %p2630_p0, %p2627_p13 }
 0x134   : > { %2635 = shalt.err (!%p2632_p2)
}
 0x135   : > { %s2636_s15 = scalar_lea.vmem %s536_s25, 16  ;;  %s2643_s20 = scalar_lea.vmem %s536_s25, 32 }
 0x136   : > { %p2637_p5 = scmp.ne.s32.totalorder %s536_s25, %s2636_s15  ;;  %p2644_p4 = scmp.lt.s32.totalorder %s536_s25, %s536_s25 }
 0x137   : > { %p2645_p10 = scmp.lt.s32.totalorder %s2643_s20, %s2636_s15 }
 0x138   : > { %p2639_p7 = pnand %p2637_p5, %p2964_p8 }
 0x139   : > { %p2646_p11 = por %p2645_p10, %p2644_p4 }
 0x13a   : > { %p2640_p9 = pneg %p2639_p7 }
 0x13c   : > { %p2647_p12 = pnand %p2646_p11, %p2640_p9 }
 0x13e   : > { %2650 = shalt.err (!%p2647_p12)
}
 0x13f   : > { %2152 = dma.hbm_to_vmem [thread:$0]  (!%p2948_p6), %s3527_s12, 16, %s536_s25, [#allocation22]  }
 0x140   : > { %s2820_s0 = smov [#allocation26]   ;;  %s2651_s24 = scalar_lea.hbm %s3529_s14, 16 }
 0x141   : > { %s557_s23 = sshll.u32 %s2820_s0, 4  ;;  %p2652_p1 = scmp.ne.s32.totalorder %s3529_s14, %s2651_s24  ;;  %s558_s23 = int_to_ptr.vmem [resolvable:$true] %s557_s23 }
 0x142   : > { %p2658_p0 = scmp.lt.u32.totalorder %s2651_s24, %s3529_s14 }
 0x143   : > { %p2654_p3 = pnand %p2652_p1, %p2964_p8 }
 0x145   : > { %p2655_p13 = pneg %p2654_p3 }
 0x147   : > { %p2660_p2 = pnand %p2658_p0, %p2655_p13 }
 0x149   : > { %2663 = shalt.err (!%p2660_p2)
}
 0x14a   : > { %s2664_s25 = scalar_lea.vmem %s558_s23, 16  ;;  %s2671_s29 = scalar_lea.vmem %s558_s23, 32 }
 0x14b   : > { %p2665_p5 = scmp.ne.s32.totalorder %s558_s23, %s2664_s25  ;;  %p2672_p4 = scmp.lt.s32.totalorder %s558_s23, %s558_s23 }
 0x14c   : > { %p2673_p10 = scmp.lt.s32.totalorder %s2671_s29, %s2664_s25 }
 0x14d   : > { %p2667_p7 = pnand %p2665_p5, %p2964_p8 }
 0x14e   : > { %p2674_p11 = por %p2673_p10, %p2672_p4 }
 0x14f   : > { %p2668_p9 = pneg %p2667_p7 }
 0x151   : > { %p2675_p12 = pnand %p2674_p11, %p2668_p9 }
 0x153   : > { %2678 = shalt.err (!%p2675_p12)
}
 0x154   : > { %s3556_s27 = sld [smem:[#allocation39_spill]]  ;;  %s3557_s16 = sld [smem:[#allocation38_spill]] }
 0x155   : > { %s3558_s26 = sld [smem:[#allocation37_spill]]  ;;  %s3559_s0 = sld [smem:[#allocation40_spill]] }
 0x156   : > { %2158 = dma.hbm_to_vmem [thread:$0]  (!%p2948_p6), %s3529_s14, 16, %s558_s23, [#allocation25]  }
 0x157   : > { %s1844_s19 = sadd.s32 4294967294, %s2803_s21   ;;  %s3249_s28 = sadd.s32 1, %s2803_s21  }
 0x158   : > { %s42_s30 = ssub.s32 %s2803_s21, %s3249_s28  ;;  %p53_p3 = scmp.eq.s32.totalorder %s2803_s21, 0 }
 0x159   : > { %p43_p8 = scmp.eq.s32.totalorder %s42_s30, 0  ;;  %p382_p7 = scmp.eq.s32.totalorder %s1844_s19, 1 }
 0x15a   : > { %s45_s24 = sadd.s32 1, %s3556_s27  ;;  %p52_p1 = scmp.ne.s32.totalorder %s3556_s27, %s3557_s16 }
 0x15b   : > { %p58_p13 = scmp.ne.s32.totalorder %s3557_s16, %s3558_s26  ;;  %p3561_p2 = scmp.eq.s32.totalorder %s3559_s0, 0 }
 0x15c   : > { %s3260_s18 = scalar_select %p43_p8, %s3556_s27, %s45_s24  }
 0x15d   : > { %p3262_p0 = por %p53_p3, %p52_p1  ;;  %p3268_p6 = por %p3561_p2, %p58_p13 }
 0x15e   : > { %p376_p5 = scmp.eq.s32.totalorder %s3559_s0, 1  ;;  %p2181_p9 = scmp.lt.s32.totalorder %s2803_s21, 2 }
 0x15f   : > { %s568_s17 = sand.u32 1, %s3556_s27   ;;  %p3279_p10 = por %p382_p7, %p58_p13 }
 0x160   : > { %p3275_p4 = por %p376_p5, %p52_p1  ;;  %s1861_s29 = sshll.u32 %s568_s17, 3 }
 0x161   : > { %s3564_s25 = scalar_select %p3279_p10, 1, 0 }
 0x162   : > { %s3563_s22 = scalar_select %p3275_p4, 1, 0 }
 0x163   : > { %s1862_s15 = sshll.u32 %s2803_s21, 7  ;;  %s3565_s26 = sld [smem:[#allocation42_spill]] }
 0x164   : > { %s572_s27 = scalar_lea.vmem [#allocation3], %s1861_s29  ;;  %p3293_p11 = pnand %p2181_p9, %p3262_p0 }
 0x165   : > { %s579_s0 = sshll.u32 %s572_s27, 4  ;;  %s569_s24 = scalar_lea.sflag [#allocation4], %s568_s17  ;;  %s3289_s0 = int_to_ptr.vmem [resolvable:$true] %s579_s0 }
 0x166   : > { %p2681_p8 = pneg %p3293_p11 }
 0x169   : > { %s3287_s30 = scalar_lea.hbm %s3565_s26, %s1862_s15  ;;  %s2684_s20 = scalar_lea.hbm %s3565_s26, 256 }
 0x16a   : > { %s2679_s2 = scalar_lea.hbm %s3287_s30, 128  ;;  %p2685_p13 = scmp.lt.u32.totalorder %s3287_s30, %s3565_s26 }
 0x16b   : > { %p2680_p12 = scmp.ne.s32.totalorder %s3287_s30, %s2679_s2  ;;  %p2686_p0 = scmp.lt.u32.totalorder %s2684_s20, %s2679_s2 }
 0x16c   : > { %p2688_p5 = scmp.lt.u32.totalorder %s2679_s2, %s3287_s30 }
 0x16d   : > { %p2682_p1 = pnand %p2681_p8, %p2680_p12  ;;  %p2687_p2 = por %p2686_p0, %p2685_p13 }
 0x16f   : > { %p2683_p3 = pneg %p2682_p1  ;;  %p2689_p7 = por %p2688_p5, %p2687_p2 }
 0x171   : > { %p2690_p9 = pnand %p2689_p7, %p2683_p3 }
 0x173   : > { %2693 = shalt.err (!%p2690_p9)
}
 0x174   : > { %s2694_s17 = scalar_lea.vmem %s3289_s0, 128  ;;  %s2821_s27 = smov [#allocation3]  }
 0x175   : > { %p2695_p12 = scmp.ne.s32.totalorder %s3289_s0, %s2694_s17  ;;  %s2699_s29 = sshll.u32 %s2821_s27, 4  ;;  %s2700_s29 = int_to_ptr.vmem [resolvable:$false] %s2699_s29 }
 0x176   : > { %s2701_s15 = scalar_lea.vmem %s2700_s29, 256  ;;  %p2702_p4 = scmp.lt.s32.totalorder %s3289_s0, %s2700_s29 }
 0x177   : > { %p2697_p1 = pnand %p2695_p12, %p2681_p8  ;;  %p2703_p13 = scmp.lt.s32.totalorder %s2701_s15, %s2694_s17 }
 0x179   : > { %p2698_p10 = pneg %p2697_p1  ;;  %p2704_p0 = por %p2703_p13, %p2702_p4 }
 0x17b   : > { %p2705_p2 = pnand %p2704_p0, %p2698_p10 }
 0x17d   : > { %2708 = shalt.err (!%p2705_p2)
}
 0x17e   : > { %2162 = dma.hbm_to_vmem [thread:$0]  (!%p3293_p11), %s3287_s30, 128, %s3289_s0, %s569_s24  }
 0x17f   : > { %s3567_s2 = sld [smem:[#allocation41_spill]] }
 0x185   : > { %p3568_p3 = scmp.ne.s32.totalorder %s3567_s2, 0 }
 0x186   : > { %s3569_s20 = sld [smem:[#allocation38_spill]] (!%p3568_p3) }
 0x187   : > { %588 = sbr.rel (%p3568_p3) target bundleno = 2663 (0xa67), region = 80 }
 0x18c   : > { %s3325_s1 = sand.u32 (!%p3568_p3), 1, %s3569_s20  }
 0x18d   : > { %s1864_s16 = sshll.u32 (!%p3568_p3), %s3325_s1, 3  ;;  %s591_s17 = scalar_lea.sflag (!%p3568_p3), [#allocation4], %s3325_s1 }
 0x18e   : > { %s3331_s27 = scalar_lea.vmem [#allocation3], %s1864_s16 }
 0x18f   : > { %2754 = dma.done.wait (%p3268_p6), %s591_s17, 128  }
 0x190   : > { %2756 = vsyncadd (%p3268_p6), %s591_s17, 4294967168  ;;  %s3570_s30 = sld [smem:[#allocation40_spill]] }
 0x196   : > { %p3571_p4 = scmp.eq.s32.totalorder %s3570_s30, 0 }
 0x198   : > { %2758 = dma.done.wait (%p3571_p4), [#allocation7], 272   ;;  %p3572_p10 = pmov %p3571_p4 }
 0x199   : > { %p3573_p11 = pmov %p3571_p4 }
 0x19a   : > { %2760 = vsyncadd (%p3572_p10), [#allocation7], 4294967024 }
 0x19b   : > { %2762 = dma.done.wait (%p3573_p11), [#allocation10], 272   ;;  %p3574_p8 = pmov %p3571_p4 }
 0x19c   : > { %p3575_p5 = pmov %p3571_p4 }
 0x19d   : > { %2764 = vsyncadd (%p3574_p8), [#allocation10], 4294967024 }
 0x19e   : > { %2766 = dma.done.wait (%p3575_p5), [#allocation13], 272   ;;  %p3576_p7 = pmov %p3571_p4 }
 0x19f   : > { %p3577_p6 = pmov %p3571_p4 }
 0x1a0   : > { %2768 = vsyncadd (%p3576_p7), [#allocation13], 4294967024 }
 0x1a1   : > { %2770 = dma.done.wait (%p3577_p6), [#allocation16], 272   ;;  %p3578_p9 = pmov %p3571_p4 }
 0x1a2   : > { %p3579_p12 = pmov %p3571_p4 }
 0x1a3   : > { %2772 = vsyncadd (%p3578_p9), [#allocation16], 4294967024 }
 0x1a4   : > { %2774 = dma.done.wait (%p3579_p12), [#allocation19], 272   ;;  %p3580_p1 = pmov %p3571_p4 }
 0x1a6   : > { %2776 = vsyncadd (%p3580_p1), [#allocation19], 4294967024  ;;  %p3581_p13 = pmov %p3580_p1 }
 0x1a7   : > { %p3582_p0 = pmov %p3580_p1 }
 0x1a8   : > { %2778 = dma.done.wait (%p3581_p13), [#allocation22], 528  }
 0x1a9   : > { %2780 = vsyncadd (%p3582_p0), [#allocation22], 4294966768  ;;  %p3583_p2 = pmov %p3582_p0 }
 0x1aa   : > { %p3584_p3 = pmov %p3582_p0 }
 0x1ab   : > { %2782 = dma.done.wait (%p3583_p2), [#allocation25], 32  }
 0x1ac   : > { %2784 = vsyncadd (%p3584_p3), [#allocation25], 4294967264  ;;  %v2822_v0 = vmov 0.0   ;;  %vm2823_vm0 = vmmov 0   ;;  %v2253_v1 = vld [vmem:[#allocation9] sm:$0xff]   ;;  %v2254_v2 = vld [vmem:[#allocation6] sm:$0xff]  }
 0x1ad   : > { %1964 = vmatprep.subr.bf16.mxu1 %v2822_v0  ;;  %1956 = vmatprep.subr.bf16.mxu0 %v2822_v0  ;;  %v2255_v3 = vld [vmem:[#allocation9 + $0x8] sm:$0xff]   ;;  %v2256_v4 = vld [vmem:[#allocation6 + $0x8] sm:$0xff]   ;;  %vm723_vm1 = vcmask 261120   ;;  %v1884_v7 = vld [vmem:[#allocation11] ss:$0 sm:$0xff]  ;;  %vm897_vm2 = vcmask 64512  }
 0x1ae   : > { %1968 = vmatprep.mubr.msk.bf16.mxu1 %vm2823_vm0, %v2822_v0  ;;  %1960 = vmatprep.mubr.msk.bf16.mxu0 %vm2823_vm0, %v2822_v0  ;;  %v3374_v5 = vld [vmem:[%s3331_s27] sm:$0xff]  ;;  %s2824_s23 = smov 112   ;;  %s2825_s0 = smov 120   ;;  %v2257_v23 = vld [vmem:[#allocation12] sm:$0xff]   ;;  %vm959_vm3 = vcmask 1043456   ;;  %vm1121_vm4 = vcmask 130112  }
 0x1af   : > { %1965 = vmatpush3.bf16.msra.mxu1 %v2253_v1  ;;  %1957 = vmatpush3.bf16.msra.mxu0 %v2254_v2  ;;  %v699_v6 = vpack.c.bf16 %v3374_v5, %v3374_v5  ;;  %v1880_v8 = vld [vmem:[#allocation8] ss:$0 sm:$0xff]  ;;  %s2826_s19 = smov 104   ;;  %v1888_v39 = vld [vmem:[#allocation14] ss:$0 sm:$0xff]  ;;  %s2827_s24 = smov 8  }
 0x1b0   : > { %1966 = vmatprep.subr.bf16.mxu1 %v2822_v0  ;;  %1958 = vmatprep.subr.bf16.mxu0 %v2822_v0  ;;  %v2258_v24 = vld [vmem:[#allocation12 + $0x8] sm:$0xff]   ;;  %s2828_s29 = smov 16   ;;  %s2829_s15 = smov 24   ;;  %vm1237_vm5 = vcmask 195712   ;;  %vm1353_vm6 = vcmask 261312   ;;  %vm1564_vm7 = vcmask 523264  }
 0x1b1   : > { %s1917_s2 = sshll.u32 %s3570_s30, 7  ;;  %s696_s20 = scalar_lea.vmem [#allocation27], %s1864_s16 }
 0x1b2   : > { %s1641_s17 = sshll.u32 %s696_s20, 4  ;;  %p3586_p10 = scmp.ne.s32.totalorder %s3563_s22, 0  ;;  %s3472_s17 = int_to_ptr.vmem [resolvable:$true] %s1641_s17 }
 0x1b3   : > { %1967 = vmatpush3.bf16.msra.mxu1 %v2255_v3  ;;  %1959 = vmatpush3.bf16.msra.mxu0 %v2256_v4  ;;  %s2830_s16 = smov [#allocation27]  }
 0x1b4   : > { %1980 = vmatprep.subr.bf16.mxu1 %v2822_v0  ;;  %1972 = vmatprep.subr.bf16.mxu0 %v2822_v0  ;;  %s2713_s30 = sshll.u32 %s2830_s16, 4  ;;  %s2714_s30 = int_to_ptr.vmem [resolvable:$false] %s2713_s30 }
 0x1b5   : > { %p2716_p5 = scmp.lt.s32.totalorder %s3472_s17, %s2714_s30 }
 0x1b6   : > { %1969 = vmatmul.mubr.msk.bf16.vlgmr.msra.gmra.mrb[0].mxu1 %vm723_vm1, %v699_v6  ;;  %1961 = vmatmul.mubr.msk.bf16.vlgmr.msra.gmra.mrb[0].mxu0 %vm723_vm1, %v699_v6 }
 0x1b7   : > { %1982 = vmatprep.mubr.msk.bf16.mxu1 %vm2823_vm0, %v2822_v0  ;;  %1976 = vmatprep.mubr.msk.bf16.mxu0 %vm2823_vm0, %v2822_v0 }
 0x1b8   : > { %1973 = vmatpush3.bf16.msra.mxu0 %v2257_v23 }
 0x1b9   : > { %1974 = vmatprep.subr.bf16.mxu0 %v2822_v0 }
 0x1bc   : > { %1975 = vmatpush3.bf16.msra.mxu0 %v2258_v24 }
 0x1bd   : > { %1986 = vmatprep.subr.bf16.mxu0 %v2822_v0 }
 0x1bf   : > { %1977 = vmatmul.mubr.msk.bf16.vlgmr.msra.gmra.mrb[4].mxu0 %vm723_vm1, %v699_v6 }
 0x1c0   : > { %1988 = vmatprep.mubr.msk.bf16.mxu0 %vm2823_vm0, %v2822_v0 }
 0x289   : > { %v824_v9 = vpop.f32.mrb[0].mxu1  ;;  %v761_v12 = vpop.f32.mrb[0].mxu0 }
 0x28a   : > { %v825_v10 = vadd.f32 %v1884_v7, %v824_v9  ;;  %v1970_v11 = vpop.f32.mrb[1].mxu1  ;;  %v762_v13 = vadd.f32 %v1880_v8, %v761_v12  ;;  %v1962_v15 = vpop.f32.mrb[1].mxu0 }
 0x28b   : > { %v827_v14 = vpop.f32.mrb[2].mxu1  ;;  %v764_v18 = vpop.f32.mrb[2].mxu0 }
 0x28c   : > { %v895_v16 = vpack.c.bf16 %v825_v10, %v825_v10  ;;  %v1971_v17 = vpop.f32.mrb[3].mxu1  ;;  %v893_v19 = vmul.f32 0.35355338, %v762_v13  ;;  %v1963_v20 = vpop.f32.mrb[3].mxu0 }
 0x28e   : > { %1125 = vrot.lane.b32.xlu1 %v895_v16, %s2824_s23  ;;  %1008 = vrot.lane.b32.xlu0 %v895_v16, %s2825_s0  ;;  %v902_v21 = vsel %vm897_vm2, %v895_v16, 0  ;;  %v894_v22 = vpack.c.bf16 %v893_v19, %v893_v19 }
 0x28f   : > { %1981 = vmatpush3.bf16.xpose.msra.mxu1 %v902_v21 }
 0x290   : > { %1992 = vmatprep.subr.bf16.mxu1 %v2822_v0 }
 0x292   : > { %1123 = vrot.lane.b32.xlu1 %v894_v22, %s2824_s23  ;;  %1005 = vrot.lane.b32.xlu0 %v894_v22, %s2825_s0  ;;  %v887_v40 = vpop.f32.mrb[4].mxu0 }
 0x293   : > { %v888_v41 = vadd.f32 %v1888_v39, %v887_v40  ;;  %v1978_v42 = vpop.f32.mrb[5].mxu0 }
 0x294   : > { %v890_v43 = vpop.f32.mrb[6].mxu0 }
 0x295   : > { %v896_v44 = vpack.c.bf16 %v888_v41, %v888_v41  ;;  %v1979_v45 = vpop.f32.mrb[7].mxu0 }
 0x296   : > { %1239 = vrot.lane.b32.xlu1 %v894_v22, %s2826_s19  ;;  %1241 = vrot.lane.b32.xlu0 %v895_v16, %s2826_s19 }
 0x297   : > { %1983 = vmatmul.mubr.msk.bf16.vlgmr.msra.gmra.mrb[4].mxu1 %vm897_vm2, %v894_v22  ;;  %v961_v46 = vsel %vm959_vm3, %v896_v44, 0 }
 0x298   : > { %1994 = vmatprep.mubr.msk.bf16.mxu1 %vm2823_vm0, %v2822_v0  ;;  %1987 = vmatpush3.bf16.msra.mxu0 %v961_v46 }
 0x299   : > { %1998 = vmatprep.subr.bf16.mxu0 %v2822_v0 }
 0x300   : > { %v1009_v25 = vpop.permute.xlu0 %1008  ;;  %v1126_v27 = vpop.permute.xlu1 %1125 }
 0x301   : > { %v1014_v26 = vsel %vm897_vm2, %v1009_v25, 0  ;;  %v1131_v29 = vsel %vm897_vm2, %v1126_v27, 0 }
 0x302   : > { %1993 = vmatpush3.bf16.xpose.msra.mxu1 %v1014_v26 }
 0x303   : > { %2004 = vmatprep.subr.bf16.mxu1 %v2822_v0 }
 0x304   : > { %v1006_v28 = vpop.permute.xlu0 %1005  ;;  %v1124_v31 = vpop.permute.xlu1 %1123 }
 0x308   : > { %v1242_v30 = vpop.permute.xlu0 %1241  ;;  %v1240_v33 = vpop.permute.xlu1 %1239 }
 0x309   : > { %1995 = vmatmul.mubr.msk.bf16.vlgmr.msra.gmra.mrb[8].mxu1 %vm897_vm2, %v1006_v28  ;;  %v1247_v32 = vsel %vm897_vm2, %v1242_v30, 0 }
 0x30a   : > { %2005 = vmatpush3.bf16.xpose.msra.mxu1 %v1131_v29  ;;  %2006 = vmatprep.mubr.msk.bf16.mxu1 %vm2823_vm0, %v2822_v0 }
 0x30b   : > { %2016 = vmatprep.subr.bf16.mxu1 %v2822_v0 }
 0x311   : > { %2007 = vmatmul.mubr.msk.bf16.vlgmr.msra.gmra.mrb[12].mxu1 %vm897_vm2, %v1124_v31 }
 0x312   : > { %2017 = vmatpush3.bf16.xpose.msra.mxu1 %v1247_v32  ;;  %2018 = vmatprep.mubr.msk.bf16.mxu1 %vm2823_vm0, %v2822_v0 }
 0x313   : > { %2028 = vmatprep.subr.bf16.mxu1 %v2822_v0 }
 0x319   : > { %2019 = vmatmul.mubr.msk.bf16.vlgmr.msra.gmra.mrb[16].mxu1 %vm897_vm2, %v1240_v33 }
 0x31a   : > { %2032 = vmatprep.mubr.msk.bf16.mxu1 %vm2823_vm0, %v2822_v0 }
 0x36a   : > { %v938_v34 = vpop.f32.mrb[4].mxu1 }
 0x36b   : > { %v1984_v35 = vpop.f32.mrb[5].mxu1  ;;  %v944_v36 = vsel %vm897_vm2, %v938_v34, -inf }
 0x36c   : > { %945 = vmax.xlane.f32.xlu0 %v944_v36  ;;  %v941_v37 = vpop.f32.mrb[6].mxu1 }
 0x36d   : > { %v1985_v38 = vpop.f32.mrb[7].mxu1 }
 0x3dc   : > { %v1050_v47 = vpop.f32.mrb[8].mxu1 }
 0x3dd   : > { %v1996_v48 = vpop.f32.mrb[9].mxu1  ;;  %v1056_v49 = vsel %vm897_vm2, %v1050_v47, -inf }
 0x3de   : > { %1057 = vmax.xlane.f32.xlu1 %v1056_v49  ;;  %v1053_v50 = vpop.f32.mrb[10].mxu1 }
 0x3df   : > { %v1997_v51 = vpop.f32.mrb[11].mxu1  ;;  %v2259_v50 = vld [vmem:[#allocation15] sm:$0xff]  }
 0x3e0   : > { %2029 = vmatpush3.bf16.msra.mxu1 %v2259_v50  ;;  %v2260_v51 = vld [vmem:[#allocation15 + $0x8] sm:$0xff]  }
 0x3e1   : > { %2030 = vmatprep.subr.bf16.mxu1 %v2822_v0 }
 0x3e4   : > { %v1167_v52 = vpop.f32.mrb[12].mxu1  ;;  %2031 = vmatpush3.bf16.msra.mxu1 %v2260_v51 }
 0x3e5   : > { %v2008_v53 = vpop.f32.mrb[13].mxu1  ;;  %v1173_v54 = vsel %vm897_vm2, %v1167_v52, -inf  ;;  %2044 = vmatprep.subr.bf16.mxu1 %v2822_v0 }
 0x3e6   : > { %1174 = vmax.xlane.f32.xlu0 %v1173_v54  ;;  %v1170_v55 = vpop.f32.mrb[14].mxu1 }
 0x3e7   : > { %v2009_v56 = vpop.f32.mrb[15].mxu1 }
 0x3ec   : > { %v1283_v57 = vpop.f32.mrb[16].mxu1 }
 0x3ed   : > { %v2020_v58 = vpop.f32.mrb[17].mxu1  ;;  %v1289_v59 = vsel %vm897_vm2, %v1283_v57, -inf }
 0x3ee   : > { %1290 = vmax.xlane.f32.xlu0 %v1289_v59  ;;  %v1286_v60 = vpop.f32.mrb[18].mxu1 }
 0x3ef   : > { %v2021_v61 = vpop.f32.mrb[19].mxu1 }
 0x3f9   : > { %v946_v62 = vpop.xlane.xlu0 %945 }
 0x3fa   : > { %v947_v63 = vsub.f32 %v938_v34, %v946_v62 }
 0x3fc   : > { %v948_v1 = vmul.f32 1.442695, %v947_v63 }
 0x3fe   : > { %2267 = vpow2.f32 %v948_v1 }
 0x408   : > { %v2268_v2 = vpop.eup %2267 }
 0x409   : > { %v950_v3 = vsel %vm897_vm2, %v2268_v2, 0.0 }
 0x40a   : > { %951 = vadd.xlane.f32.xlu1 %v950_v3 }
 0x41b   : > { %1069 = vrot.lane.b32.xlu1 %v896_v44, %s2825_s0  ;;  %s3585_s0 = sld [smem:[#allocation45_spill]] }
 0x46b   : > { %v1058_v4 = vpop.xlane.xlu1 %1057 }
 0x46c   : > { %v1059_v6 = vsub.f32 %v1050_v47, %v1058_v4 }
 0x46e   : > { %v1060_v7 = vmul.f32 1.442695, %v1059_v6 }
 0x470   : > { %2269 = vpow2.f32 %v1060_v7 }
 0x473   : > { %v1175_v8 = vpop.xlane.xlu0 %1174 }
 0x474   : > { %v1176_v9 = vsub.f32 %v1167_v52, %v1175_v8 }
 0x476   : > { %v1177_v10 = vmul.f32 1.442695, %v1176_v9 }
 0x478   : > { %2271 = vpow2.f32 %v1177_v10 }
 0x47a   : > { %v2270_v11 = vpop.eup %2269 }
 0x47b   : > { %v1291_v12 = vpop.xlane.xlu0 %1290  ;;  %v1062_v13 = vsel %vm897_vm2, %v2270_v11, 0.0 }
 0x47c   : > { %v1292_v14 = vsub.f32 %v1283_v57, %v1291_v12  ;;  %1063 = vadd.xlane.f32.xlu0 %v1062_v13  ;;  %v2261_v13 = vld [vmem:[#allocation18] sm:$0xff]  }
 0x47e   : > { %v1293_v15 = vmul.f32 1.442695, %v1292_v14  ;;  %v2262_v14 = vld [vmem:[#allocation18 + $0x8] sm:$0xff]  }
 0x480   : > { %2273 = vpow2.f32 %v1293_v15  ;;  %v2263_v15 = vld [vmem:[#allocation21] sm:$0xff]  }
 0x482   : > { %v2272_v16 = vpop.eup %2271 }
 0x483   : > { %v1179_v17 = vsel %vm897_vm2, %v2272_v16, 0.0 }
 0x484   : > { %1180 = vadd.xlane.f32.xlu1 %v1179_v17 }
 0x48a   : > { %v2274_v18 = vpop.eup %2273 }
 0x48b   : > { %v1295_v19 = vsel %vm897_vm2, %v2274_v18, 0.0 }
 0x48c   : > { %1296 = vadd.xlane.f32.xlu0 %v1295_v19 }
 0x495   : > { %1301 = vrot.lane.b32.xlu1 %v896_v44, %s2826_s19  ;;  %s3470_s19 = scalar_lea.hbm %s3585_s0, %s1917_s2 }
 0x497   : > { %v952_v20 = vpop.xlane.xlu1 %951 }
 0x498   : > { %2275 = vrcp.f32 %v952_v20 }
 0x49b   : > { %v1070_v22 = vpop.permute.xlu1 %1069 }
 0x49c   : > { %v1075_v25 = vsel %vm959_vm3, %v1070_v22, 0 }
 0x4a2   : > { %v2276_v21 = vpop.eup %2275  ;;  %1185 = vrot.lane.b32.xlu0 %v896_v44, %s2824_s23 }
 0x4a3   : > { %v954_v23 = vmul.f32 %v2276_v21, %v2268_v2  ;;  %v1900_v2 = vld [vmem:[#allocation17] ss:$0 sm:$0xff] }
 0x4a5   : > { %v955_v24 = vpack.c.bf16 %v954_v23, %v954_v23 }
 0x4a7   : > { %1989 = vmatmul.mubr.msk.bf16.vlgmr.msra.gmra.mrb[8].mxu0 %vm897_vm2, %v955_v24 }
 0x4a8   : > { %1999 = vmatpush3.bf16.msra.mxu0 %v1075_v25  ;;  %2000 = vmatprep.mubr.msk.bf16.mxu0 %vm2823_vm0, %v2822_v0  ;;  %v1904_v25 = vld [vmem:[#allocation24] ss:$0 sm:$0xff] }
 0x4a9   : > { %2010 = vmatprep.subr.bf16.mxu0 %v2822_v0 }
 0x509   : > { %v1064_v26 = vpop.xlane.xlu0 %1063 }
 0x50a   : > { %2277 = vrcp.f32 %v1064_v26 }
 0x511   : > { %v1181_v27 = vpop.xlane.xlu1 %1180 }
 0x512   : > { %2279 = vrcp.f32 %v1181_v27  ;;  %v1905_v27 = vld [vmem:[#allocation26] ss:$0 sm:$0xff] }
 0x514   : > { %v2278_v28 = vpop.eup %2277 }
 0x515   : > { %v1066_v29 = vmul.f32 %v2278_v28, %v2270_v11  ;;  %v1302_v36 = vpop.permute.xlu1 %1301 }
 0x516   : > { %v1307_v38 = vsel %vm959_vm3, %v1302_v36, 0 }
 0x517   : > { %v1067_v30 = vpack.c.bf16 %v1066_v29, %v1066_v29 }
 0x519   : > { %v1297_v31 = vpop.xlane.xlu0 %1296  ;;  %2001 = vmatmul.mubr.msk.bf16.vlgmr.msra.gmra.mrb[12].mxu0 %vm897_vm2, %v1067_v30 }
 0x51a   : > { %2281 = vrcp.f32 %v1297_v31  ;;  %2012 = vmatprep.mubr.msk.bf16.mxu0 %vm2823_vm0, %v2822_v0  ;;  %v2265_v31 = vld [vmem:[#allocation21 + $0x10] sm:$0xff]  }
 0x51c   : > { %v2280_v32 = vpop.eup %2279 }
 0x51d   : > { %v1183_v33 = vmul.f32 %v2280_v32, %v2272_v16  ;;  %v1186_v34 = vpop.permute.xlu0 %1185  ;;  %v2264_v16 = vld [vmem:[#allocation21 + $0x8] sm:$0xff]   ;;  %v2266_v32 = vld [vmem:[#allocation21 + $0x18] sm:$0xff]  }
 0x51e   : > { %v1191_v35 = vsel %vm959_vm3, %v1186_v34, 0 }
 0x51f   : > { %2011 = vmatpush3.bf16.msra.mxu0 %v1191_v35  ;;  %v1184_v37 = vpack.c.bf16 %v1183_v33, %v1183_v33  ;;  %v1906_v33 = vld [vmem:[#allocation20] ss:$0 sm:$0xff] }
 0x520   : > { %2022 = vmatprep.subr.bf16.mxu0 %v2822_v0 }
 0x522   : > { %2013 = vmatmul.mubr.msk.bf16.vlgmr.msra.gmra.mrb[16].mxu0 %vm897_vm2, %v1184_v37 }
 0x523   : > { %2023 = vmatpush3.bf16.msra.mxu0 %v1307_v38  ;;  %2024 = vmatprep.mubr.msk.bf16.mxu0 %vm2823_vm0, %v2822_v0 }
 0x524   : > { %v2282_v39 = vpop.eup %2281  ;;  %2036 = vmatprep.subr.bf16.mxu0 %v2822_v0 }
 0x525   : > { %v1299_v40 = vmul.f32 %v2282_v39, %v2274_v18 }
 0x527   : > { %v1300_v41 = vpack.c.bf16 %v1299_v40, %v1299_v40 }
 0x52a   : > { %2025 = vmatmul.mubr.msk.bf16.vlgmr.msra.gmra.mrb[20].mxu0 %vm897_vm2, %v1300_v41  ;;  %v1910_v41 = vld [vmem:[#allocation23] ss:$0 sm:$0xff] }
 0x52b   : > { %2040 = vmatprep.mubr.msk.bf16.mxu0 %vm2823_vm0, %v2822_v0  ;;  %2037 = vmatpush3.bf16.msra.mxu0 %v2261_v13 }
 0x52c   : > { %2038 = vmatprep.subr.bf16.mxu0 %v2822_v0 }
 0x52f   : > { %2039 = vmatpush3.bf16.msra.mxu0 %v2262_v14 }
 0x57a   : > { %v997_v42 = vpop.f32.mrb[8].mxu0 }
 0x57b   : > { %1003 = vst.msk [vmem:[#allocation2] sm:$0xff] %vm897_vm2, %v997_v42  ;;  %v1990_v43 = vpop.f32.mrb[9].mxu0 }
 0x57c   : > { %v1000_v44 = vpop.f32.mrb[10].mxu0 }
 0x57d   : > { %v1991_v45 = vpop.f32.mrb[11].mxu0 }
 0x5ec   : > { %v1111_v46 = vpop.f32.mrb[12].mxu0 }
 0x5ed   : > { %1118 = vrot.lane.b32.xlu1 %v1111_v46, %s2827_s24  ;;  %v2002_v47 = vpop.f32.mrb[13].mxu0  ;;  %s1628_s24 = scalar_lea.sflag [#allocation5], %s3325_s1 }
 0x5ee   : > { %v1114_v48 = vpop.f32.mrb[14].mxu0 }
 0x5ef   : > { %v2003_v49 = vpop.f32.mrb[15].mxu0 }
 0x5f5   : > { %v1227_v52 = vpop.f32.mrb[16].mxu0 }
 0x5f6   : > { %1234 = vrot.lane.b32.xlu0 %v1227_v52, %s2828_s29  ;;  %v2014_v53 = vpop.f32.mrb[17].mxu0  ;;  %s2709_s29 = scalar_lea.vmem %s3472_s17, 128 }
 0x5f7   : > { %v1230_v54 = vpop.f32.mrb[18].mxu0  ;;  %p2710_p4 = scmp.ne.s32.totalorder %s3472_s17, %s2709_s29 }
 0x5f8   : > { %v2015_v55 = vpop.f32.mrb[19].mxu0 }
 0x5f9   : > { %p2711_p11 = pnand %p2710_p4, %p3586_p10 }
 0x5fb   : > { %p2712_p8 = pneg %p2711_p11 }
 0x5fd   : > { %v1343_v56 = vpop.f32.mrb[20].mxu0 }
 0x5fe   : > { %1350 = vrot.lane.b32.xlu1 %v1343_v56, %s2829_s15  ;;  %v2026_v57 = vpop.f32.mrb[21].mxu0  ;;  %s2715_s15 = scalar_lea.vmem %s2714_s30, 256 }
 0x5ff   : > { %v1346_v58 = vpop.f32.mrb[22].mxu0  ;;  %p2717_p7 = scmp.lt.s32.totalorder %s2715_s15, %s2709_s29 }
 0x600   : > { %v2027_v59 = vpop.f32.mrb[23].mxu0 }
 0x601   : > { %p2718_p6 = por %p2717_p7, %p2716_p5 }
 0x603   : > { %p2719_p9 = pnand %p2718_p6, %p2712_p8 }
 0x65f   : > { %v1119_v60 = vpop.permute.xlu1 %1118 }
 0x660   : > { %1122 = vst.msk [vmem:[#allocation2] sm:$0xff] %vm1121_vm4, %v1119_v60 }
 0x668   : > { %v1235_v61 = vpop.permute.xlu0 %1234 }
 0x669   : > { %1238 = vst.msk [vmem:[#allocation2] sm:$0xff] %vm1237_vm5, %v1235_v61 }
 0x670   : > { %v1351_v62 = vpop.permute.xlu1 %1350 }
 0x671   : > { %1354 = vst.msk [vmem:[#allocation2] sm:$0xff] %vm1353_vm6, %v1351_v62 }
 0x678   : > { %v1355_v63 = vld [vmem:[#allocation2] sm:$0xff] }
 0x679   : > { %v1356_v1 = vpack.c.bf16 %v1355_v63, %v1355_v63 }
 0x67b   : > { %2033 = vmatmul.mubr.msk.bf16.vlgmr.msra.gmra.mrb[20].mxu1 %vm723_vm1, %v1356_v1 }
 0x67c   : > { %2052 = vmatprep.mubr.msk.bf16.mxu1 %vm2823_vm0, %v2822_v0  ;;  %2045 = vmatpush3.bf16.msra.mxu1 %v2263_v15 }
 0x67d   : > { %2046 = vmatprep.subr.bf16.mxu1 %v2822_v0 }
 0x680   : > { %2047 = vmatpush3.bf16.msra.mxu1 %v2264_v16 }
 0x681   : > { %2048 = vmatprep.subr.bf16.mxu1 %v2822_v0 }
 0x684   : > { %2049 = vmatpush3.bf16.msra.mxu1 %v2265_v31 }
 0x685   : > { %2050 = vmatprep.subr.bf16.mxu1 %v2822_v0 }
 0x688   : > { %2051 = vmatpush3.bf16.msra.mxu1 %v2266_v32 }
 0x74e   : > { %v1417_v3 = vpop.f32.mrb[20].mxu1 }
 0x74f   : > { %v1418_v4 = vadd.f32 %v1900_v2, %v1417_v3  ;;  %v2034_v6 = vpop.f32.mrb[21].mxu1 }
 0x750   : > { %v1420_v7 = vpop.f32.mrb[22].mxu1 }
 0x751   : > { %v1423_v8 = vadd.f32 %v1418_v4, %v3374_v5  ;;  %v2035_v9 = vpop.f32.mrb[23].mxu1 }
 0x753   : > { %v1426_v10 = vsel %vm723_vm1, %v1423_v8, 0.0  ;;  %v1431_v11 = vmul.f32 %v1423_v8, %v1423_v8 }
 0x754   : > { %1427 = vadd.xlane.f32.xlu0 %v1426_v10 }
 0x755   : > { %v1432_v12 = vsel %vm723_vm1, %v1431_v11, 0.0 }
 0x756   : > { %1433 = vadd.xlane.f32.xlu1 %v1432_v12 }
 0x7e1   : > { %v1428_v5 = vpop.xlane.xlu0 %1427 }
 0x7e2   : > { %v1430_v17 = vmul.f32 0.03125, %v1428_v5 }
 0x7e3   : > { %v1434_v18 = vpop.xlane.xlu1 %1433 }
 0x7e4   : > { %v1436_v19 = vmul.f32 %v1430_v17, %v1430_v17  ;;  %v1435_v20 = vmul.f32 0.03125, %v1434_v18  ;;  %v1440_v23 = vsub.f32 %v1423_v8, %v1430_v17 }
 0x7e6   : > { %v1437_v21 = vsub.f32 %v1435_v20, %v1436_v19 }
 0x7e8   : > { %v1438_v22 = vadd.f32 1e-05, %v1437_v21 }
 0x7ea   : > { %2283 = vrsqrt.f32 %v1438_v22 }
 0x7f4   : > { %v2284_v24 = vpop.eup %2283 }
 0x7f5   : > { %v1441_v26 = vmul.f32 %v2284_v24, %v1440_v23 }
 0x7f7   : > { %v1448_v28 = vmul.f32 %v1904_v25, %v1441_v26 }
 0x7f9   : > { %v1455_v29 = vadd.f32 %v1905_v27, %v1448_v28 }
 0x7fb   : > { %v1456_v30 = vpack.c.bf16 %v1455_v29, %v1455_v29 }
 0x7fd   : > { %2041 = vmatmul.mubr.msk.bf16.vlgmr.msra.gmra.mrb[24].mxu0 %vm723_vm1, %v1456_v30 }
 0x8d0   : > { %v1517_v34 = vpop.f32.mrb[24].mxu0 }
 0x8d1   : > { %v1518_v35 = vadd.f32 %v1906_v33, %v1517_v34  ;;  %v2042_v36 = vpop.f32.mrb[25].mxu0 }
 0x8d2   : > { %v1520_v37 = vpop.f32.mrb[26].mxu0 }
 0x8d3   : > { %v1523_v38 = vmax.f32 %v1518_v35, 0.0  ;;  %v2043_v39 = vpop.f32.mrb[27].mxu0 }
 0x8d5   : > { %v1524_v40 = vpack.c.bf16 %v1523_v38, %v1523_v38 }
 0x8d7   : > { %2053 = vmatmul.mubr.msk.bf16.vlgmr.msra.gmra.mrb[24].mxu1 %vm1564_vm7, %v1524_v40 }
 0x9aa   : > { %v1602_v42 = vpop.f32.mrb[24].mxu1 }
 0x9ab   : > { %v1603_v43 = vadd.f32 %v1910_v41, %v1602_v42  ;;  %v2054_v44 = vpop.f32.mrb[25].mxu1 }
 0x9ac   : > { %v1605_v45 = vpop.f32.mrb[26].mxu1 }
 0x9ad   : > { %v1608_v46 = vadd.f32 %v1603_v43, %v1455_v29  ;;  %v2055_v47 = vpop.f32.mrb[27].mxu1 }
 0x9af   : > { %v1609_v0 = vsel %vm723_vm1, %v1608_v46, 0.0  ;;  %v1613_v48 = vmul.f32 %v1608_v46, %v1608_v46 }
 0x9b0   : > { %1610 = vadd.xlane.f32.xlu0 %v1609_v0 }
 0x9b1   : > { %v1614_v49 = vsel %vm723_vm1, %v1613_v48, 0.0 }
 0x9b4   : > { %1615 = vadd.xlane.f32.xlu0 %v1614_v49 }
 0xa3d   : > { %v1611_v50 = vpop.xlane.xlu0 %1610 }
 0xa3e   : > { %v1612_v51 = vmul.f32 0.03125, %v1611_v50 }
 0xa40   : > { %v1618_v53 = vmul.f32 %v1612_v51, %v1612_v51  ;;  %v1622_v57 = vsub.f32 %v1608_v46, %v1612_v51 }
 0xa41   : > { %v1616_v52 = vpop.xlane.xlu0 %1615 }
 0xa42   : > { %v1617_v54 = vmul.f32 0.03125, %v1616_v52 }
 0xa44   : > { %v1619_v55 = vsub.f32 %v1617_v54, %v1618_v53 }
 0xa46   : > { %v1620_v56 = vadd.f32 1e-05, %v1619_v55 }
 0xa48   : > { %2285 = vrsqrt.f32 %v1620_v56 }
 0xa52   : > { %v2286_v58 = vpop.eup %2285 }
 0xa53   : > { %v1623_v59 = vmul.f32 %v2286_v58, %v1622_v57 }
 0xa55   : > { %v1624_v60 = vmul.f32 %v1904_v25, %v1623_v59 }
 0xa57   : > { %v1625_v61 = vadd.f32 %v1905_v27, %v1624_v60 }
 0xa59   : > { %1626 = vst.msk [vmem:[%s696_s20] sm:$0xff] %vm723_vm1, %v1625_v61 }
 0xa5a   : > { %2722 = shalt.err (!%p2719_p9)
}
 0xa5b   : > { %s2723_s1 = scalar_lea.hbm %s3470_s19, 128  ;;  %s2727_s27 = scalar_lea.hbm %s3585_s0, 256 }
 0xa5c   : > { %p2724_p12 = scmp.ne.s32.totalorder %s3470_s19, %s2723_s1  ;;  %p2728_p0 = scmp.lt.u32.totalorder %s3470_s19, %s3585_s0 }
 0xa5d   : > { %p2729_p2 = scmp.lt.u32.totalorder %s2727_s27, %s2723_s1  ;;  %p2731_p4 = scmp.lt.u32.totalorder %s2723_s1, %s3470_s19 }
 0xa5e   : > { %p2725_p1 = pnand %p2724_p12, %p3586_p10 }
 0xa5f   : > { %p2730_p3 = por %p2729_p2, %p2728_p0 }
 0xa60   : > { %p2726_p13 = pneg %p2725_p1 }
 0xa61   : > { %p2732_p11 = por %p2731_p4, %p2730_p3 }
 0xa63   : > { %p2733_p8 = pnand %p2732_p11, %p2726_p13 }
 0xa65   : > { %2736 = shalt.err (!%p2733_p8)
}
 0xa66   : > { %2114 = dma.vmem_to_hbm [thread:$0]  (%p3586_p10), %s3472_s17, 128, %s3470_s19, %s1628_s24  }
 0xa67 PF: > { %s3587_s29 = sld [smem:[#allocation37_spill]]  ;;  %p3588_p5 = scmp.ne.s32.totalorder %s3564_s25, 0 }
 0xa68   : > { %p3589_p7 = scmp.ge.s32.totalorder %s2803_s21, 2 }
 0xa6a   : > { %p2164_p6 = pnand %p3589_p7, %p3588_p5 }
 0xa6d   : > { %s1653_s30 = sand.u32 1, %s3587_s29  }
 0xa6e   : > { %s1654_s15 = scalar_lea.sflag [#allocation5], %s1653_s30 }
 0xa6f   : > { %2786 = dma.done.wait (!%p2164_p6), %s1654_s15, 128  }
 0xa70   : > { %2788 = vsyncadd (!%p2164_p6), %s1654_s15, 4294967168  ;;  %s3590_s1 = sld [smem:[#allocation38_spill]]  ;;  %s3591_s19 = sld [smem:[#allocation39_spill]] }
 0xa71   : > { %s3592_s2 = smov %s3260_s18  ;;  %p35_p9 = scmp.ge.s32.totalorder %s3249_s28, 4  }
 0xa72   : > { %s3594_s20 = smov %s3592_s2  ;;  %s3595_s21 = smov %s3249_s28 }
 0xa73   :  { %37 = sbr.rel (!%p35_p9) target bundleno = 17 (0x11), region = 181 }
 0xa76   : > { %s3593_s18 = smov %s3590_s1 }
 0xa7a   :  { %1659 = vsyncpa [#allocation4], 1 }
 0xa7b   :  { %1661 = vsyncpa [#allocation4 + $0x1], 1 }
 0xa7c   :  { %1662 = vsyncpa [#allocation7], 1 }
 0xa7d   :  { %1663 = vsyncpa [#allocation10], 1 }
 0xa7e   :  { %1664 = vsyncpa [#allocation13], 1 }
 0xa7f   :  { %1665 = vsyncpa [#allocation16], 1 }
 0xa80   :  { %1666 = vsyncpa [#allocation19], 1 }
 0xa81   :  { %1667 = vsyncpa [#allocation22], 1 }
 0xa82   :  { %1668 = vsyncpa [#allocation25], 1 }
 0xa83   :  { %1669 = vsyncpa [#allocation5], 1 }
 0xa84   :  { %1671 = vsyncpa [#allocation5 + $0x1], 1 }

</bundles_post_ra>
